<compile_context>
chip_gen: v7x
topology: tpu7x:2x2x1
jax: 0.10.0
libtpu: 0.0.40
codegen_flags: <defaults>
</compile_context>

<pallas_src>
import math
import numpy as np

import jax
import jax.numpy as jnp
from jax import lax
from jax.experimental import pallas as pl
from jax.experimental.pallas import tpu as pltpu


# ------------------------------ Pallas kernel --------------------------------

def llama_attention_pallas(x, wq, wk, wv, wo, num_heads, num_kv_heads,
                           q_block=256):
    """x: (B, S, D) f32. wq:(H*hd, D) wk/wv:(KV*hd, D) wo:(D, D) in PyTorch
    (out, in) layout. Returns (B, S, D) f32."""
    B, S, D = x.shape
    HD = D // num_heads
    HD2 = HD // 2
    KV = num_kv_heads
    QPKV = num_heads // num_kv_heads
    GH = QPKV * HD                                   # query width per kv group
    scale = 1.0 / math.sqrt(HD)

    TQ = q_block if (S % q_block == 0) else S        # query-row block
    n_tq = S // TQ

    # --- rotary tables (== precompute_rotary_emb(HD, max_pos)[:S]), in
    #     full-lane rotate-half form: cos_full=[cos,cos], sin_signed=[-sin,sin]
    pos = jnp.arange(S, dtype=jnp.float32)[:, None]
    inv = jnp.exp(jnp.arange(0, HD, 2, dtype=jnp.float32)
                  * (-math.log(10000.0) / HD))
    ang = pos * inv
    sin = jnp.sin(ang)                               # (S, HD//2)
    cos = jnp.cos(ang)                               # (S, HD//2)
    cos_full = jnp.concatenate([cos, cos], axis=-1)          # (S, HD)
    sin_signed = jnp.concatenate([-sin, sin], axis=-1)       # (S, HD)

    # --- host-side weight prep ---
    # Per-head permutation of q/k OUTPUT features: interleaved (even, odd)
    # pairs -> rotate-half ([evens..., odds...]).  Applied identically to q
    # and k, so per-head q.k^T scores are unchanged; v / o_proj are untouched.
    perm = np.concatenate([np.arange(0, HD, 2), np.arange(1, HD, 2)])

    def permute_heads(w, n_h):
        return w.reshape(n_h, HD, D)[:, perm, :].reshape(n_h * HD, D)

    wq_p = permute_heads(wq, num_heads) * scale      # fold 1/sqrt(hd) into q
    wk_p = permute_heads(wk, KV)

    # regroup per kv group, transpose to (in, out), cast to bf16 for the MXU
    wq_g = wq_p.T.reshape(D, KV, GH).transpose(1, 0, 2).astype(jnp.bfloat16)   # (KV, D, GH)
    wk_t = wk_p.T.reshape(D, KV, HD)                                           # (D, KV, HD)
    wv_t = wv.T.reshape(D, KV, HD)
    wkv_g = jnp.concatenate([wk_t, wv_t], axis=-1).transpose(1, 0, 2)          # (KV, D, 2HD)
    wkv_g = wkv_g.astype(jnp.bfloat16)
    wo_g = wo.T.reshape(KV, GH, D).astype(jnp.bfloat16)                        # (KV, GH, D)

    x_b = x.astype(jnp.bfloat16)                     # bf16 x once, in the wrapper

    def kernel(xs_ref, xq_ref, wq_ref, wkv_ref, wo_ref,
               cos_s_ref, sin_s_ref, cos_q_ref, sin_q_ref,
               o_ref, k_scr, v_scr):
        tq = pl.program_id(1)
        g = pl.program_id(2)

        def rope(t, c, s):
            # t is (rows, HD) f32 in rotate-half column layout.
            return t * c + pltpu.roll(t, shift=HD2, axis=1) * s

        # rotated-K / V group projections: computed once per (batch, group)
        # at tq == 0, cached in VMEM, reused for every query-row block.
        @pl.when(tq == 0)
        def _():
            xs = xs_ref[0]                                               # (S, D) bf16
            kv = jnp.dot(xs, wkv_ref[0],
                         preferred_element_type=jnp.float32)            # (S, 2*HD)
            k_scr[g] = rope(kv[:, :HD], cos_s_ref[...],
                            sin_s_ref[...]).astype(jnp.bfloat16)
            v_scr[g] = kv[:, HD:].astype(jnp.bfloat16)

        kg = k_scr[g]                                                    # (S, HD) bf16
        vg = v_scr[g]                                                    # (S, HD) bf16

        # query projection for this row block (scale already folded into wq)
        xq = xq_ref[0]                                                   # (TQ, D) bf16
        qg = jnp.dot(xq, wq_ref[0],
                     preferred_element_type=jnp.float32)                 # (TQ, GH)
        cq = cos_q_ref[...]
        sq = sin_q_ref[...]

        # static head loop (QPKV is small); head outputs are concatenated so
        # o_proj is a single K=GH matmul per group.
        heads = []
        for h in range(QPKV):
            qh = rope(qg[:, h * HD:(h + 1) * HD], cq, sq).astype(jnp.bfloat16)
            s = lax.dot_general(qh, kg, (((1,), (1,)), ((), ())),
                                preferred_element_type=jnp.float32)      # (TQ, S)
            m = jnp.max(s, axis=-1, keepdims=True)
            p = jnp.exp(s - m)
            l = jnp.sum(p, axis=-1, keepdims=True)
            ho = jnp.dot(p.astype(jnp.bfloat16), vg,
                         preferred_element_type=jnp.float32)             # (TQ, HD)
            # deferred softmax normalization on the (TQ, HD) result
            ho = ho * pl.reciprocal(l, approx=True)
            heads.append(ho.astype(jnp.bfloat16))

        go = jnp.dot(jnp.concatenate(heads, axis=-1), wo_ref[0],
                     preferred_element_type=jnp.float32)                 # (TQ, D)

        # o_proj reduction over kv groups accumulated directly in the resident
        # output block (no scratch accumulator, no final copy).
        @pl.when(g == 0)
        def _():
            o_ref[0] = go

        @pl.when(g > 0)
        def _():
            o_ref[0] += go

    return pl.pallas_call(
        kernel,
        out_shape=jax.ShapeDtypeStruct((B, S, D), jnp.float32),
        grid_spec=pltpu.PrefetchScalarGridSpec(
            num_scalar_prefetch=0,
            grid=(B, n_tq, KV),
            in_specs=[
                pl.BlockSpec((1, S, D), lambda b, t, g: (b, 0, 0)),      # x full seq (K/V)
                pl.BlockSpec((1, TQ, D), lambda b, t, g: (b, t, 0)),     # x query rows
                pl.BlockSpec((1, D, GH), lambda b, t, g: (g, 0, 0)),     # wq group slice
                pl.BlockSpec((1, D, 2 * HD), lambda b, t, g: (g, 0, 0)),  # fused wk|wv group
                pl.BlockSpec((1, GH, D), lambda b, t, g: (g, 0, 0)),     # wo group rows
                pl.BlockSpec((S, HD), lambda b, t, g: (0, 0)),           # cos (full seq)
                pl.BlockSpec((S, HD), lambda b, t, g: (0, 0)),           # sin (full seq)
                pl.BlockSpec((TQ, HD), lambda b, t, g: (t, 0)),          # cos (query rows)
                pl.BlockSpec((TQ, HD), lambda b, t, g: (t, 0)),          # sin (query rows)
            ],
            out_specs=pl.BlockSpec((1, TQ, D), lambda b, t, g: (b, t, 0)),
            scratch_shapes=[
                pltpu.VMEM((KV, S, HD), jnp.bfloat16),   # rotated-K cache
                pltpu.VMEM((KV, S, HD), jnp.bfloat16),   # V cache
            ],
        ),
        # batch is "parallel" (carries the v7x 2-TC split); the TQ axis stays
        # "arbitrary" because the K/V VMEM cache carries state across it.
        compiler_params=pltpu.CompilerParams(
            dimension_semantics=("parallel", "arbitrary", "arbitrary")),
    )(x_b, x_b, wq_g, wkv_g, wo_g, cos_full, sin_signed, cos_full, sin_signed)


# ------------------------- numpy (float64) reference --------------------------

def reference_forward(x, wq, wk, wv, wo, num_heads, num_kv_heads):
    x = np.asarray(x, np.float64)
    wq, wk, wv, wo = (np.asarray(w, np.float64) for w in (wq, wk, wv, wo))
    B, S, D = x.shape
    HD = D // num_heads
    qpkv = num_heads // num_kv_heads

    q = (x @ wq.T).reshape(B, S, num_heads, HD)
    k = (x @ wk.T).reshape(B, S, num_kv_heads, HD)
    v = (x @ wv.T).reshape(B, S, num_kv_heads, HD)

    pos = np.arange(S)[:, None]
    div = np.exp(np.arange(0, HD, 2) * (-math.log(10000.0) / HD))
    ang = pos * div
    sin, cos = np.sin(ang), np.cos(ang)

    def rot(t):
        tr = t.reshape(*t.shape[:-1], -1, 2)
        x1, x2 = tr[..., 0], tr[..., 1]
        s = sin[None, :, None, :]
        c = cos[None, :, None, :]
        out = np.stack([x1 * c - x2 * s, x2 * c + x1 * s], axis=-1)
        return out.reshape(t.shape)

    q = rot(q).transpose(0, 2, 1, 3)            # (B, H, S, hd)
    k = rot(k).transpose(0, 2, 1, 3)            # (B, KV, S, hd)
    v = v.transpose(0, 2, 1, 3)
    if qpkv > 1:
        k = np.repeat(k, qpkv, axis=1)
        v = np.repeat(v, qpkv, axis=1)
    scale = 1.0 / math.sqrt(HD)
    scores = (q @ k.transpose(0, 1, 3, 2)) * scale
    scores = scores - scores.max(-1, keepdims=True)
    attn = np.exp(scores)
    attn = attn / attn.sum(-1, keepdims=True)
    out = attn @ v
    out = out.transpose(0, 2, 1, 3).reshape(B, S, -1)
    return out @ wo.T


# ----------------------------------- main -------------------------------------

if __name__ == "__main__":
    # head_dim = 128 (real Llama head width, lane-aligned), small everything else.
    B, S, DIM = 2, 8, 512
    NUM_HEADS, NUM_KV_HEADS = 4, 2
    HD = DIM // NUM_HEADS

    key = jax.random.PRNGKey(0)
    kx, kq, kk, kv, ko = jax.random.split(key, 5)
    x = jax.random.normal(kx, (B, S, DIM), dtype=jnp.float32)
    wq = jax.random.normal(kq, (NUM_HEADS * HD, DIM), dtype=jnp.float32) * 0.05
    wk = jax.random.normal(kk, (NUM_KV_HEADS * HD, DIM), dtype=jnp.float32) * 0.05
    wv = jax.random.normal(kv, (NUM_KV_HEADS * HD, DIM), dtype=jnp.float32) * 0.05
    wo = jax.random.normal(ko, (DIM, DIM), dtype=jnp.float32) * 0.05

    out = llama_attention_pallas(x, wq, wk, wv, wo, NUM_HEADS, NUM_KV_HEADS)
    out = jax.block_until_ready(out)

    ref = reference_forward(x, wq, wk, wv, wo, NUM_HEADS, NUM_KV_HEADS)
    # bf16 MXU operands (x, weights, probabilities) + approx reciprocal at
    # D=512 accumulation depth -> looser tolerance than pure-f32; an
    # algorithmic error would show up as O(1) differences.
    np.testing.assert_allclose(np.asarray(out), ref, rtol=5e-2, atol=5e-2)

    print("KERNEL_OK")
</pallas_src>

<mosaic_0001>
module attributes {stable_mosaic.version = 11 : i64} {
  func.func @kernel(%arg0: i32, %arg1: i32, %arg2: i32, %arg3: memref<1x8x512xbf16, #tpu.memory_space<vmem>>, %arg4: memref<1x8x512xbf16, #tpu.memory_space<vmem>>, %arg5: memref<1x512x256xbf16, #tpu.memory_space<vmem>>, %arg6: memref<1x512x256xbf16, #tpu.memory_space<vmem>>, %arg7: memref<1x256x512xbf16, #tpu.memory_space<vmem>>, %arg8: memref<8x128xf32, #tpu.memory_space<vmem>>, %arg9: memref<8x128xf32, #tpu.memory_space<vmem>>, %arg10: memref<8x128xf32, #tpu.memory_space<vmem>>, %arg11: memref<8x128xf32, #tpu.memory_space<vmem>>, %arg12: memref<1x8x512xf32, #tpu.memory_space<vmem>>, %arg13: memref<2x8x128xbf16, #tpu.memory_space<vmem>>, %arg14: memref<2x8x128xbf16, #tpu.memory_space<vmem>>) attributes {dimension_semantics = [#tpu.dimension_semantics<parallel>, #tpu.dimension_semantics<arbitrary>, #tpu.dimension_semantics<arbitrary>], iteration_bounds = array<i64: 2, 1, 2>, scalar_prefetch = 0 : i64, scratch_operands = 2 : i64, tpu.core_type = #tpu.core_type<tc>, window_params = [{transform_indices = @transform_0, window_bounds = array<i64: 1, 8, 512>}, {transform_indices = @transform_1, window_bounds = array<i64: 1, 8, 512>}, {transform_indices = @transform_2, window_bounds = array<i64: 1, 512, 256>}, {transform_indices = @transform_3, window_bounds = array<i64: 1, 512, 256>}, {transform_indices = @transform_4, window_bounds = array<i64: 1, 256, 512>}, {pipeline_mode = #tpu.pipeline_mode<synchronous>, transform_indices = @transform_5, window_bounds = array<i64: 8, 128>}, {pipeline_mode = #tpu.pipeline_mode<synchronous>, transform_indices = @transform_6, window_bounds = array<i64: 8, 128>}, {transform_indices = @transform_7, window_bounds = array<i64: 8, 128>}, {transform_indices = @transform_8, window_bounds = array<i64: 8, 128>}, {transform_indices = @transform_9, window_bounds = array<i64: 1, 8, 512>}]} {
    %c0_i32 = arith.constant 0 : i32
    %0 = arith.cmpi eq, %arg1, %c0_i32 : i32
    %1 = arith.extui %0 : i1 to i32
    %c0_i32_0 = arith.constant 0 : i32
    %2 = arith.cmpi ne, %1, %c0_i32_0 : i32
    scf.if %2 {
      %c0_31 = arith.constant 0 : index
      %c0_32 = arith.constant 0 : index
      %c0_33 = arith.constant 0 : index
      %66 = vector.load %arg3[%c0_31, %c0_32, %c0_33] : memref<1x8x512xbf16, #tpu.memory_space<vmem>>, vector<1x8x512xbf16>
      %67 = vector.shape_cast %66 : vector<1x8x512xbf16> to vector<8x512xbf16>
      %c0_34 = arith.constant 0 : index
      %c0_35 = arith.constant 0 : index
      %c0_36 = arith.constant 0 : index
      %68 = vector.load %arg6[%c0_34, %c0_35, %c0_36] : memref<1x512x256xbf16, #tpu.memory_space<vmem>>, vector<1x512x256xbf16>
      %69 = vector.shape_cast %68 : vector<1x512x256xbf16> to vector<512x256xbf16>
      %cst_37 = arith.constant dense<0.000000e+00> : vector<8x256xf32>
      %70 = tpu.matmul %67, %69, %cst_37 {dimension_numbers = #tpu.dot_dimension_numbers<[1], [0], [0], [1], [0, 0, 1, 1], [], []>} : vector<8x512xbf16>, vector<512x256xbf16>, vector<8x256xf32> -> vector<8x256xf32>
      %71 = vector.extract_strided_slice %70 {offsets = [0, 0], sizes = [8, 128], strides = [1, 1]} : vector<8x256xf32> to vector<8x128xf32>
      %c0_38 = arith.constant 0 : index
      %c0_39 = arith.constant 0 : index
      %72 = vector.load %arg8[%c0_38, %c0_39] : memref<8x128xf32, #tpu.memory_space<vmem>>, vector<8x128xf32>
      %c0_40 = arith.constant 0 : index
      %c0_41 = arith.constant 0 : index
      %73 = vector.load %arg9[%c0_40, %c0_41] : memref<8x128xf32, #tpu.memory_space<vmem>>, vector<8x128xf32>
      %74 = arith.mulf %71, %72 : vector<8x128xf32>
      %c64_i32_42 = arith.constant 64 : i32
      %75 = tpu.dynamic_rotate %71 by %c64_i32_42 dim 1 : vector<8x128xf32>, i32 -> vector<8x128xf32>
      %76 = arith.mulf %75, %73 : vector<8x128xf32>
      %77 = arith.addf %74, %76 : vector<8x128xf32>
      %78 = arith.truncf %77 : vector<8x128xf32> to vector<8x128xbf16>
      %79 = arith.index_cast %arg2 : i32 to index
      %c0_43 = arith.constant 0 : index
      %c0_44 = arith.constant 0 : index
      %80 = vector.load %arg13[%79, %c0_43, %c0_44] : memref<2x8x128xbf16, #tpu.memory_space<vmem>>, vector<1x8x128xbf16>
      %81 = vector.shape_cast %80 : vector<1x8x128xbf16> to vector<8x128xbf16>
      %82 = vector.shape_cast %78 : vector<8x128xbf16> to vector<1x8x128xbf16>
      tpu.vector_store %arg13[%79, %c0_43, %c0_44], %82 {strides = array<i32>} : memref<2x8x128xbf16, #tpu.memory_space<vmem>>, vector<1x8x128xbf16>,
      %83 = vector.extract_strided_slice %70 {offsets = [0, 128], sizes = [8, 128], strides = [1, 1]} : vector<8x256xf32> to vector<8x128xf32>
      %84 = arith.truncf %83 : vector<8x128xf32> to vector<8x128xbf16>
      %85 = arith.index_cast %arg2 : i32 to index
      %c0_45 = arith.constant 0 : index
      %c0_46 = arith.constant 0 : index
      %86 = vector.load %arg14[%85, %c0_45, %c0_46] : memref<2x8x128xbf16, #tpu.memory_space<vmem>>, vector<1x8x128xbf16>
      %87 = vector.shape_cast %86 : vector<1x8x128xbf16> to vector<8x128xbf16>
      %88 = vector.shape_cast %84 : vector<8x128xbf16> to vector<1x8x128xbf16>
      tpu.vector_store %arg14[%85, %c0_45, %c0_46], %88 {strides = array<i32>} : memref<2x8x128xbf16, #tpu.memory_space<vmem>>, vector<1x8x128xbf16>,
    } else {
    }
    %3 = arith.index_cast %arg2 : i32 to index
    %c0 = arith.constant 0 : index
    %c0_1 = arith.constant 0 : index
    %4 = vector.load %arg13[%3, %c0, %c0_1] : memref<2x8x128xbf16, #tpu.memory_space<vmem>>, vector<1x8x128xbf16>
    %5 = vector.shape_cast %4 : vector<1x8x128xbf16> to vector<8x128xbf16>
    %6 = arith.index_cast %arg2 : i32 to index
    %c0_2 = arith.constant 0 : index
    %c0_3 = arith.constant 0 : index
    %7 = vector.load %arg14[%6, %c0_2, %c0_3] : memref<2x8x128xbf16, #tpu.memory_space<vmem>>, vector<1x8x128xbf16>
    %8 = vector.shape_cast %7 : vector<1x8x128xbf16> to vector<8x128xbf16>
    %c0_4 = arith.constant 0 : index
    %c0_5 = arith.constant 0 : index
    %c0_6 = arith.constant 0 : index
    %9 = vector.load %arg4[%c0_4, %c0_5, %c0_6] : memref<1x8x512xbf16, #tpu.memory_space<vmem>>, vector<1x8x512xbf16>
    %10 = vector.shape_cast %9 : vector<1x8x512xbf16> to vector<8x512xbf16>
    %c0_7 = arith.constant 0 : index
    %c0_8 = arith.constant 0 : index
    %c0_9 = arith.constant 0 : index
    %11 = vector.load %arg5[%c0_7, %c0_8, %c0_9] : memref<1x512x256xbf16, #tpu.memory_space<vmem>>, vector<1x512x256xbf16>
    %12 = vector.shape_cast %11 : vector<1x512x256xbf16> to vector<512x256xbf16>
    %cst = arith.constant dense<0.000000e+00> : vector<8x256xf32>
    %13 = tpu.matmul %10, %12, %cst {dimension_numbers = #tpu.dot_dimension_numbers<[1], [0], [0], [1], [0, 0, 1, 1], [], []>} : vector<8x512xbf16>, vector<512x256xbf16>, vector<8x256xf32> -> vector<8x256xf32>
    %c0_10 = arith.constant 0 : index
    %c0_11 = arith.constant 0 : index
    %14 = vector.load %arg10[%c0_10, %c0_11] : memref<8x128xf32, #tpu.memory_space<vmem>>, vector<8x128xf32>
    %c0_12 = arith.constant 0 : index
    %c0_13 = arith.constant 0 : index
    %15 = vector.load %arg11[%c0_12, %c0_13] : memref<8x128xf32, #tpu.memory_space<vmem>>, vector<8x128xf32>
    %16 = vector.extract_strided_slice %13 {offsets = [0, 0], sizes = [8, 128], strides = [1, 1]} : vector<8x256xf32> to vector<8x128xf32>
    %17 = arith.mulf %16, %14 : vector<8x128xf32>
    %c64_i32 = arith.constant 64 : i32
    %18 = tpu.dynamic_rotate %16 by %c64_i32 dim 1 : vector<8x128xf32>, i32 -> vector<8x128xf32>
    %19 = arith.mulf %18, %15 : vector<8x128xf32>
    %20 = arith.addf %17, %19 : vector<8x128xf32>
    %21 = arith.truncf %20 : vector<8x128xf32> to vector<8x128xbf16>
    %cst_14 = arith.constant dense<0.000000e+00> : vector<8x8xf32>
    %22 = tpu.matmul %21, %5, %cst_14 {dimension_numbers = #tpu.dot_dimension_numbers<[1], [1], [0], [0], [0, 0, 1, 0], [], []>} : vector<8x128xbf16>, vector<8x128xbf16>, vector<8x8xf32> -> vector<8x8xf32>
    %cst_15 = arith.constant dense<0xFF800000> : vector<8xf32>
    %23 = vector.multi_reduction <maximumf>, %22, %cst_15 [1] : vector<8x8xf32> to vector<8xf32>
    %24 = vector.shape_cast %23 : vector<8xf32> to vector<8x1xf32>
    %25 = vector.broadcast %24 : vector<8x1xf32> to vector<8x8xf32>
    %26 = arith.subf %22, %25 : vector<8x8xf32>
    %27 = math.exp %26 : vector<8x8xf32>
    %cst_16 = arith.constant dense<0.000000e+00> : vector<8xf32>
    %28 = vector.multi_reduction <add>, %27, %cst_16 [1] : vector<8x8xf32> to vector<8xf32>
    %29 = vector.shape_cast %28 : vector<8xf32> to vector<8x1xf32>
    %30 = arith.truncf %27 : vector<8x8xf32> to vector<8x8xbf16>
    %cst_17 = arith.constant dense<0.000000e+00> : vector<8x128xf32>
    %31 = tpu.matmul %30, %8, %cst_17 {dimension_numbers = #tpu.dot_dimension_numbers<[1], [0], [0], [1], [0, 0, 1, 1], [], []>} : vector<8x8xbf16>, vector<8x128xbf16>, vector<8x128xf32> -> vector<8x128xf32>
    %32 = tpu.reciprocal %29 {approx = true} : vector<8x1xf32> -> vector<8x1xf32>
    %33 = vector.broadcast %32 : vector<8x1xf32> to vector<8x128xf32>
    %34 = arith.mulf %31, %33 : vector<8x128xf32>
    %35 = arith.truncf %34 : vector<8x128xf32> to vector<8x128xbf16>
    %36 = vector.extract_strided_slice %13 {offsets = [0, 128], sizes = [8, 128], strides = [1, 1]} : vector<8x256xf32> to vector<8x128xf32>
    %37 = arith.mulf %36, %14 : vector<8x128xf32>
    %c64_i32_18 = arith.constant 64 : i32
    %38 = tpu.dynamic_rotate %36 by %c64_i32_18 dim 1 : vector<8x128xf32>, i32 -> vector<8x128xf32>
    %39 = arith.mulf %38, %15 : vector<8x128xf32>
    %40 = arith.addf %37, %39 : vector<8x128xf32>
    %41 = arith.truncf %40 : vector<8x128xf32> to vector<8x128xbf16>
    %cst_19 = arith.constant dense<0.000000e+00> : vector<8x8xf32>
    %42 = tpu.matmul %41, %5, %cst_19 {dimension_numbers = #tpu.dot_dimension_numbers<[1], [1], [0], [0], [0, 0, 1, 0], [], []>} : vector<8x128xbf16>, vector<8x128xbf16>, vector<8x8xf32> -> vector<8x8xf32>
    %cst_20 = arith.constant dense<0xFF800000> : vector<8xf32>
    %43 = vector.multi_reduction <maximumf>, %42, %cst_20 [1] : vector<8x8xf32> to vector<8xf32>
    %44 = vector.shape_cast %43 : vector<8xf32> to vector<8x1xf32>
    %45 = vector.broadcast %44 : vector<8x1xf32> to vector<8x8xf32>
    %46 = arith.subf %42, %45 : vector<8x8xf32>
    %47 = math.exp %46 : vector<8x8xf32>
    %cst_21 = arith.constant dense<0.000000e+00> : vector<8xf32>
    %48 = vector.multi_reduction <add>, %47, %cst_21 [1] : vector<8x8xf32> to vector<8xf32>
    %49 = vector.shape_cast %48 : vector<8xf32> to vector<8x1xf32>
    %50 = arith.truncf %47 : vector<8x8xf32> to vector<8x8xbf16>
    %cst_22 = arith.constant dense<0.000000e+00> : vector<8x128xf32>
    %51 = tpu.matmul %50, %8, %cst_22 {dimension_numbers = #tpu.dot_dimension_numbers<[1], [0], [0], [1], [0, 0, 1, 1], [], []>} : vector<8x8xbf16>, vector<8x128xbf16>, vector<8x128xf32> -> vector<8x128xf32>
    %52 = tpu.reciprocal %49 {approx = true} : vector<8x1xf32> -> vector<8x1xf32>
    %53 = vector.broadcast %52 : vector<8x1xf32> to vector<8x128xf32>
    %54 = arith.mulf %51, %53 : vector<8x128xf32>
    %55 = arith.truncf %54 : vector<8x128xf32> to vector<8x128xbf16>
    %56 = tpu.concatenate %35, %55 in 1 : vector<8x128xbf16>, vector<8x128xbf16> -> vector<8x256xbf16>
    %c0_23 = arith.constant 0 : index
    %c0_24 = arith.constant 0 : index
    %c0_25 = arith.constant 0 : index
    %57 = vector.load %arg7[%c0_23, %c0_24, %c0_25] : memref<1x256x512xbf16, #tpu.memory_space<vmem>>, vector<1x256x512xbf16>
    %58 = vector.shape_cast %57 : vector<1x256x512xbf16> to vector<256x512xbf16>
    %cst_26 = arith.constant dense<0.000000e+00> : vector<8x512xf32>
    %59 = tpu.matmul %56, %58, %cst_26 {dimension_numbers = #tpu.dot_dimension_numbers<[1], [0], [0], [1], [0, 0, 1, 1], [], []>} : vector<8x256xbf16>, vector<256x512xbf16>, vector<8x512xf32> -> vector<8x512xf32>
    %c0_i32_27 = arith.constant 0 : i32
    %60 = arith.cmpi eq, %arg2, %c0_i32_27 : i32
    %61 = arith.extui %60 : i1 to i32
    %c0_i32_28 = arith.constant 0 : i32
    %62 = arith.cmpi ne, %61, %c0_i32_28 : i32
    scf.if %62 {
      %c0_31 = arith.constant 0 : index
      %c0_32 = arith.constant 0 : index
      %c0_33 = arith.constant 0 : index
      %66 = vector.load %arg12[%c0_31, %c0_32, %c0_33] : memref<1x8x512xf32, #tpu.memory_space<vmem>>, vector<1x8x512xf32>
      %67 = vector.shape_cast %66 : vector<1x8x512xf32> to vector<8x512xf32>
      %68 = vector.shape_cast %59 : vector<8x512xf32> to vector<1x8x512xf32>
      tpu.vector_store %arg12[%c0_31, %c0_32, %c0_33], %68 {strides = array<i32>} : memref<1x8x512xf32, #tpu.memory_space<vmem>>, vector<1x8x512xf32>,
    } else {
    }
    %c0_i32_29 = arith.constant 0 : i32
    %63 = arith.cmpi sgt, %arg2, %c0_i32_29 : i32
    %64 = arith.extui %63 : i1 to i32
    %c0_i32_30 = arith.constant 0 : i32
    %65 = arith.cmpi ne, %64, %c0_i32_30 : i32
    scf.if %65 {
      %c0_31 = arith.constant 0 : index
      %c0_32 = arith.constant 0 : index
      %c0_33 = arith.constant 0 : index
      %66 = vector.load %arg12[%c0_31, %c0_32, %c0_33] : memref<1x8x512xf32, #tpu.memory_space<vmem>>, vector<1x8x512xf32>
      %67 = vector.shape_cast %66 : vector<1x8x512xf32> to vector<8x512xf32>
      %68 = arith.addf %67, %59 : vector<8x512xf32>
      %c0_34 = arith.constant 0 : index
      %c0_35 = arith.constant 0 : index
      %c0_36 = arith.constant 0 : index
      %69 = vector.load %arg12[%c0_34, %c0_35, %c0_36] : memref<1x8x512xf32, #tpu.memory_space<vmem>>, vector<1x8x512xf32>
      %70 = vector.shape_cast %69 : vector<1x8x512xf32> to vector<8x512xf32>
      %71 = vector.shape_cast %68 : vector<8x512xf32> to vector<1x8x512xf32>
      tpu.vector_store %arg12[%c0_34, %c0_35, %c0_36], %71 {strides = array<i32>} : memref<1x8x512xf32, #tpu.memory_space<vmem>>, vector<1x8x512xf32>,
    } else {
    }
    return
  }
  func.func @transform_0(%arg0: i32, %arg1: i32, %arg2: i32) -> (i32, i32, i32) {
    %c0_i32 = arith.constant 0 : i32
    %c0_i32_0 = arith.constant 0 : i32
    %c0_i32_1 = arith.constant 0 : i32
    return %arg0, %c0_i32, %c0_i32_0 : i32, i32, i32
  }
  func.func @transform_1(%arg0: i32, %arg1: i32, %arg2: i32) -> (i32, i32, i32) {
    %c0_i32 = arith.constant 0 : i32
    %c0_i32_0 = arith.constant 0 : i32
    return %arg0, %arg1, %c0_i32 : i32, i32, i32
  }
  func.func @transform_2(%arg0: i32, %arg1: i32, %arg2: i32) -> (i32, i32, i32) {
    %c0_i32 = arith.constant 0 : i32
    %c0_i32_0 = arith.constant 0 : i32
    %c0_i32_1 = arith.constant 0 : i32
    return %arg2, %c0_i32, %c0_i32_0 : i32, i32, i32
  }
  func.func @transform_3(%arg0: i32, %arg1: i32, %arg2: i32) -> (i32, i32, i32) {
    %c0_i32 = arith.constant 0 : i32
    %c0_i32_0 = arith.constant 0 : i32
    %c0_i32_1 = arith.constant 0 : i32
    return %arg2, %c0_i32, %c0_i32_0 : i32, i32, i32
  }
  func.func @transform_4(%arg0: i32, %arg1: i32, %arg2: i32) -> (i32, i32, i32) {
    %c0_i32 = arith.constant 0 : i32
    %c0_i32_0 = arith.constant 0 : i32
    %c0_i32_1 = arith.constant 0 : i32
    return %arg2, %c0_i32, %c0_i32_0 : i32, i32, i32
  }
  func.func @transform_5(%arg0: i32, %arg1: i32, %arg2: i32) -> (i32, i32) {
    %c0_i32 = arith.constant 0 : i32
    %c0_i32_0 = arith.constant 0 : i32
    %c0_i32_1 = arith.constant 0 : i32
    return %c0_i32, %c0_i32_0 : i32, i32
  }
  func.func @transform_6(%arg0: i32, %arg1: i32, %arg2: i32) -> (i32, i32) {
    %c0_i32 = arith.constant 0 : i32
    %c0_i32_0 = arith.constant 0 : i32
    %c0_i32_1 = arith.constant 0 : i32
    return %c0_i32, %c0_i32_0 : i32, i32
  }
  func.func @transform_7(%arg0: i32, %arg1: i32, %arg2: i32) -> (i32, i32) {
    %c0_i32 = arith.constant 0 : i32
    %c0_i32_0 = arith.constant 0 : i32
    return %arg1, %c0_i32 : i32, i32
  }
  func.func @transform_8(%arg0: i32, %arg1: i32, %arg2: i32) -> (i32, i32) {
    %c0_i32 = arith.constant 0 : i32
    %c0_i32_0 = arith.constant 0 : i32
    return %arg1, %c0_i32 : i32, i32
  }
  func.func @transform_9(%arg0: i32, %arg1: i32, %arg2: i32) -> (i32, i32, i32) {
    %c0_i32 = arith.constant 0 : i32
    %c0_i32_0 = arith.constant 0 : i32
    return %arg0, %arg1, %c0_i32 : i32, i32, i32
  }
}

</mosaic_0001>

<bundles_post_ra>
// kernel: tpu_custom_call.1
= control target key start
LH: loop header
LB: loop body
LE: loop exit
PB: predicated region body
PF: predicated region fallthrough
CT: control target
= control target key end

     0   :  { %s4299_s0 = inlined_call_operand.hbm [shape: bf16[2,8,512], index: 0, kind: input, shape index: {}]   ;;  %s4300_s1 = inlined_call_operand.hbm [shape: bf16[2,8,512], index: 1, kind: input, shape index: {}]   ;;  %s4301_s2 = inlined_call_operand.hbm [shape: bf16[2,512,256], index: 2, kind: input, shape index: {}]   ;;  %s4302_s3 = inlined_call_operand.hbm [shape: bf16[2,512,256], index: 3, kind: input, shape index: {}]   ;;  %s4303_s4 = inlined_call_operand.hbm [shape: bf16[2,256,512], index: 4, kind: input, shape index: {}]   ;;  %s4304_s5 = inlined_call_operand.vmem [shape: f32[8,128], index: 5, kind: input, shape index: {}]   ;;  %s4305_s6 = inlined_call_operand.vmem [shape: f32[8,128], index: 6, kind: input, shape index: {}]   ;;  %s4306_s7 = inlined_call_operand.vmem [shape: f32[8,128], index: 7, kind: input, shape index: {}]   ;;  %s4307_s8 = inlined_call_operand.hbm [shape: f32[8,128], index: 8, kind: input, shape index: {}]   ;;  %s4308_s9 = inlined_call_operand.hbm [shape: f32[2,8,512], index: 9, kind: output, shape index: {}]  }
   0x1   :  { %4341 = sst [smem:[#allocation35_spill]] %s4299_s0 }
   0x2   :  { %4342 = sst [smem:[#allocation36_spill]] %s4300_s1 }
   0x3   :  { %4343 = sst [smem:[#allocation37_spill]] %s4302_s3 }
   0x4   :  { %4344 = sst [smem:[#allocation38_spill]] %s4304_s5 }
   0x5   :  { %4345 = sst [smem:[#allocation39_spill]] %s4305_s6 }
   0x6   :  { %4346 = sst [smem:[#allocation40_spill]] %s4306_s7 }
   0x7   :  { %4347 = sst [smem:[#allocation41_spill]] %s4308_s9 }
   0x8   :  { %14 = vsyncpa [#allocation5], 0 }
   0x9   :  { %16 = vsyncpa [#allocation5 + $0x1], 0 }
   0xa   :  { %17 = vsyncpa [#allocation8], 0 }
   0xb   :  { %19 = vsyncpa [#allocation8 + $0x1], 0 }
   0xc   :  { %20 = vsyncpa [#allocation11], 0 }
   0xd   :  { %22 = vsyncpa [#allocation11 + $0x1], 0 }
   0xe   :  { %23 = vsyncpa [#allocation14], 0 }
   0xf   :  { %24 = vsyncpa [#allocation6], 0 }
  0x10   :  { %26 = vsyncpa [#allocation6 + $0x1], 0  ;;  %s3596_s30 = smov 0   ;;  %s3598_s10 = smov 0  }
  0x11   :  { %s3600_s11 = smov 0   ;;  %s3602_s12 = smov 0  }
  0x12   :  { %s3604_s13 = smov 0   ;;  %s3606_s14 = smov 0  }
  0x13   :  { %s3608_s15 = smov 0   ;;  %s3610_s16 = smov 0  }
  0x14   :  { %s3612_s17 = smov 0   ;;  %s3614_s18 = smov 0  }
  0x15   :  { %s3616_s19 = smov 0  }
  0x16 LB: > { %4348 = sst [smem:[#allocation22_spill]] %s3498_s11  ;;  %s44_s20 = sadd.s32 1, %s3522_s17  ;;  %s3530_s19 = sphi %s3616_s19, %s32_s19   ;;  %s3526_s18 = sphi %s3614_s18, %s4410_s18   ;;  %s3522_s17 = sphi %s3612_s17, %s4409_s17   ;;  %s3518_s16 = sphi %s3610_s16, %s4415_s16   ;;  %s3514_s15 = sphi %s3608_s15, %s4407_s15   ;;  %s3510_s14 = sphi %s3606_s14, %s4406_s14   ;;  %s3506_s13 = sphi %s3604_s13, %s4414_s13   ;;  %s3502_s12 = sphi %s3602_s12, %s4413_s12   ;;  %s3498_s11 = sphi %s3600_s11, %s4404_s11   ;;  %s3494_s10 = sphi %s3598_s10, %s4412_s10   ;;  %s3490_s30 = sphi %s3596_s30, %s4411_s30  }
  0x17   : > { %4349 = sst [smem:[#allocation23_spill]] %s3502_s12  ;;  %s51_s21 = sadd.s32 1, %s3526_s18 }
  0x18   : > { %4350 = sst [smem:[#allocation24_spill]] %s3510_s14  ;;  %p45_p0 = scmp.ge.s32.totalorder %s44_s20, 2 }
  0x19   : > { %4351 = sst [smem:[#allocation25_spill]] %s3518_s16  ;;  %s58_s22 = sadd.s32 1, %s3510_s14 }
  0x1a   : > { %4352 = sst [smem:[#allocation26_spill]] %s3522_s17  ;;  %p4315_p1 = scmp.ne.s32.totalorder %s3510_s14, %s3506_s13 }
  0x1b   : > { %4353 = sst [smem:[#allocation27_spill]] %s3526_s18  ;;  %p66_p2 = scmp.eq.s32.totalorder %s3530_s19, 0 }
  0x1c   : > { %4354 = sst [smem:[#allocation28_spill]] %s3530_s19  ;;  %s4417_s20 = smov (%p45_p0, %s44_s20), 0 }
  0x1d   : > { %4355 = sst [smem:[#allocation29_spill]] %s4417_s20  ;;  %s4419_s21 = smov (!%p45_p0, %s51_s21), %s3526_s18 }
  0x1e   : > { %p3663_p3 = por %p66_p2, %p4315_p1  ;;  %s109_s24 = ssub.s32 %s3522_s17, %s4417_s20 }
  0x1f   : > { %p53_p4 = scmp.ge.s32.totalorder %s4419_s21, 2  ;;  %p110_p5 = scmp.eq.s32.totalorder %s109_s24, 0 }
  0x20   : > { %s112_s25 = sadd.s32 1, %s3498_s11  ;;  %p119_p6 = scmp.ne.s32.totalorder %s3498_s11, %s3494_s10 }
  0x21   : > { %s4421_s21 = smov (%p53_p4, %s4419_s21), 0  ;;  %p2811_p9 = scmp.lt.s32.totalorder %s3530_s19, 4 }
  0x22   : > { %4357 = sst [smem:[#allocation30_spill]] %s4421_s21  ;;  %s55_s27 = ssub.s32 %s3526_s18, %s4421_s21 }
  0x23   : > { %s3675_s26 = scalar_select %p110_p5, %s3498_s11, %s112_s25  }
  0x24   : > { %p121_p7 = por %p119_p6, %p66_p2  ;;  %p56_p8 = scmp.eq.s32.totalorder %s55_s27, 0 }
  0x25   : > { %4358 = sst [smem:[#allocation31_spill]] %s3675_s26  ;;  %s4312_s28 = sand.u32 1, %s3510_s14  }
  0x26   : > { %s3682_s29 = scalar_select %p56_p8, %s3510_s14, %s58_s22  }
  0x27   : > { %s3686_s20 = sshll.u32 %s4312_s28, 4  ;;  %s4313_s24 = sshll.u32 %s3526_s18, 8 }
  0x28   : > { %4359 = sst [smem:[#allocation32_spill]] %s3682_s29  ;;  %p3691_p10 = pnand %p2811_p9, %p3663_p3 }
  0x29   : > { %s4314_s25 = sand.u32 1, %s3530_s19   ;;  %s4361_s1 = sld [smem:[#allocation36_spill]] }
  0x2a   : > { %s4360_s9 = scalar_select %p3691_p10, 1, 0 }
  0x2b   : > { %s372_s22 = scalar_lea.vmem [#allocation7], %s3686_s20  ;;  %p3704_p11 = pnand %p2811_p9, %p121_p7 }
  0x2c   : > { %s382_s28 = sshll.u32 %s372_s22, 4  ;;  %s3712_s29 = scalar_lea.sflag [#allocation8], %s4314_s25  ;;  %s3708_s28 = int_to_ptr.vmem [resolvable:$true] %s382_s28 }
  0x2d   : > { %s4362_s23 = scalar_select %p3704_p11, 1, 0 }
  0x2e   : > { %p4318_p13 = pneg %p3691_p10 }
  0x2f   : > { %s3701_s26 = scalar_lea.hbm %s4361_s1, %s4313_s24  ;;  %s3219_s22 = scalar_lea.hbm %s4361_s1, 512 }
  0x30   : > { %s3214_s16 = scalar_lea.hbm %s3701_s26, 256  ;;  %p3220_p3 = scmp.lt.u32.totalorder %s3701_s26, %s4361_s1 }
  0x31   : > { %p3215_p12 = scmp.ne.s32.totalorder %s3701_s26, %s3214_s16  ;;  %p3221_p4 = scmp.lt.u32.totalorder %s3219_s22, %s3214_s16 }
  0x32   : > { %p3223_p6 = scmp.lt.u32.totalorder %s3214_s16, %s3701_s26 }
  0x33   : > { %p3217_p0 = pnand %p4318_p13, %p3215_p12  ;;  %p3222_p5 = por %p3221_p4, %p3220_p3 }
  0x35   : > { %p3218_p2 = pneg %p3217_p0  ;;  %p3224_p7 = por %p3223_p6, %p3222_p5 }
  0x37   : > { %p3225_p8 = pnand %p3224_p7, %p3218_p2 }
  0x39   : > { %3228 = shalt.err (!%p3225_p8)
}
  0x3a   : > { %s3229_s25 = scalar_lea.vmem %s3708_s28, 256  ;;  %s3532_s21 = smov [#allocation7]  }
  0x3b   : > { %p3230_p9 = scmp.ne.s32.totalorder %s3708_s28, %s3229_s25  ;;  %s3234_s27 = sshll.u32 %s3532_s21, 4  ;;  %s3235_s27 = int_to_ptr.vmem [resolvable:$false] %s3234_s27 }
  0x3c   : > { %s3236_s7 = scalar_lea.vmem %s3235_s27, 512  ;;  %p3237_p1 = scmp.lt.s32.totalorder %s3708_s28, %s3235_s27 }
  0x3d   : > { %p3232_p12 = pnand %p3230_p9, %p4318_p13  ;;  %p3238_p3 = scmp.lt.s32.totalorder %s3236_s7, %s3229_s25 }
  0x3f   : > { %p3233_p0 = pneg %p3232_p12  ;;  %p3239_p4 = por %p3238_p3, %p3237_p1 }
  0x41   : > { %p3240_p5 = pnand %p3239_p4, %p3233_p0 }
  0x43   : > { %3243 = shalt.err (!%p3240_p5)
}
  0x44   : > { %2796 = dma.hbm_to_vmem [thread:$0]  (!%p3691_p10), %s3701_s26, 256, %s3708_s28, %s3712_s29  }
  0x45   : > { %s391_s16 = sand.u32 1, %s3498_s11   ;;  %s3744_s22 = sshll.u32 %s3522_s17, 13 }
  0x46   : > { %s3741_s24 = sshll.u32 %s391_s16, 9  ;;  %s4363_s3 = sld [smem:[#allocation37_spill]] }
  0x47   : > { %s414_s7 = scalar_lea.vmem [#allocation10], %s3741_s24  ;;  %s4364_s26 = sand.u32 1, %s3530_s19  }
  0x48   : > { %s421_s1 = sshll.u32 %s414_s7, 4  ;;  %s3757_s28 = scalar_lea.sflag [#allocation11], %s4364_s26  ;;  %s3753_s1 = int_to_ptr.vmem [resolvable:$true] %s421_s1 }
  0x49   : > { %p3763_p2 = pneg %p3704_p11 }
  0x4b   : > { %s4365_s17 = scalar_select %p3763_p2, 1, 0 }
  0x4c   : > { %s3750_s27 = scalar_lea.hbm %s4363_s3, %s3744_s22  ;;  %s3249_s7 = scalar_lea.hbm %s4363_s3, 16384 }
  0x4d   : > { %s3244_s16 = scalar_lea.hbm %s3750_s27, 8192  ;;  %p3250_p8 = scmp.lt.u32.totalorder %s3750_s27, %s4363_s3 }
  0x4e   : > { %p3245_p1 = scmp.ne.s32.totalorder %s3750_s27, %s3244_s16  ;;  %p3251_p9 = scmp.lt.u32.totalorder %s3249_s7, %s3244_s16 }
  0x4f   : > { %p3253_p0 = scmp.lt.u32.totalorder %s3244_s16, %s3750_s27 }
  0x50   : > { %p3247_p6 = pnand %p3763_p2, %p3245_p1  ;;  %p3252_p12 = por %p3251_p9, %p3250_p8 }
  0x52   : > { %p3248_p7 = pneg %p3247_p6  ;;  %p3254_p3 = por %p3253_p0, %p3252_p12 }
  0x54   : > { %p3255_p4 = pnand %p3254_p3, %p3248_p7 }
  0x56   : > { %3258 = shalt.err (!%p3255_p4)
}
  0x57   : > { %s3259_s26 = scalar_lea.vmem %s3753_s1, 8192  ;;  %s3533_s25 = smov [#allocation10]  }
  0x58   : > { %p3260_p5 = scmp.ne.s32.totalorder %s3753_s1, %s3259_s26  ;;  %s3264_s21 = sshll.u32 %s3533_s25, 4  ;;  %s3265_s21 = int_to_ptr.vmem [resolvable:$false] %s3264_s21 }
  0x59   : > { %s3266_s6 = scalar_lea.vmem %s3265_s21, 16384  ;;  %p3267_p13 = scmp.lt.s32.totalorder %s3753_s1, %s3265_s21 }
  0x5a   : > { %p3262_p1 = pnand %p3260_p5, %p3763_p2  ;;  %p3268_p10 = scmp.lt.s32.totalorder %s3266_s6, %s3259_s26 }
  0x5c   : > { %p3263_p6 = pneg %p3262_p1  ;;  %p3269_p8 = por %p3268_p10, %p3267_p13 }
  0x5e   : > { %p3270_p9 = pnand %p3269_p8, %p3263_p6 }
  0x60   : > { %3273 = shalt.err (!%p3270_p9)
}
  0x61   : > { %s4322_s11 = smov 128   ;;  %s4323_s16 = smov 8  }
  0x62   : > { %2802 = dma.hbm_to_vmem [thread:$0]  (!%p3704_p11), %s3750_s27, 8192, %s3753_s1, %s3757_s28, %s4322_s11, %s4322_s11, %s4323_s16  }
  0x63   : > { %s3791_s7 = sadd.s32 4294967295, %s3530_s19   ;;  %s2483_s26 = sadd.s32 4294967294, %s3530_s19  }
  0x64   : > { %p71_p10 = scmp.ne.s32.totalorder %s3506_s13, %s3502_s12  ;;  %p4331_p13 = scmp.eq.s32.totalorder %s3791_s7, 0 }
  0x65   : > { %p125_p7 = scmp.ne.s32.totalorder %s3494_s10, %s3490_s30  ;;  %p297_p12 = scmp.eq.s32.totalorder %s3791_s7, 3 }
  0x66   : > { %p3802_p0 = por %p4331_p13, %p71_p10  ;;  %p303_p3 = scmp.eq.s32.totalorder %s2483_s26, 3 }
  0x67   : > { %p3808_p4 = por %p125_p7, %p4331_p13  ;;  %p4368_p5 = scmp.ne.s32.totalorder %s3510_s14, %s3506_s13 }
  0x68   : > { %s4366_s25 = scalar_select %p3802_p0, 1, 0 }
  0x69   : > { %s4367_s1 = scalar_select %p3808_p4, 1, 0 }
  0x6a   : > { %p3815_p1 = por %p297_p12, %p4368_p5  ;;  %p3819_p6 = por %p303_p3, %p71_p10 }
  0x6b   : > { %p2484_p8 = scmp.ge.s32.totalorder %s3530_s19, 1  ;;  %p310_p9 = scmp.lt.s32.totalorder %s3530_s19, 5 }
  0x6c   : > { %s4369_s27 = scalar_select %p3815_p1, 1, 0 }
  0x6d   : > { %s4371_s30 = scalar_select %p3819_p6, 1, 0 }
  0x6e   : > { %4370 = sst [smem:[#allocation33_spill]] %s4369_s27  ;;  %p3825_p0 = pnand %p2484_p8, %p310_p9 }
  0x6f   : > { %4372 = sst [smem:[#allocation34_spill]] %s4371_s30  ;;  %s3536_s6 = smov [#allocation13]  }
  0x70   : > { %s4373_s21 = scalar_select %p3825_p0, 1, 0 }
  0x71   : > { %s338_s26 = sshll.u32 %s3536_s6, 4  ;;  %p2786_p7 = pneg %p3825_p0  ;;  %s3829_s26 = int_to_ptr.vmem [resolvable:$true] %s338_s26 }
  0x72   : > { %s4374_s11 = sshll.u32 %s3526_s18, 8  ;;  %s4375_s0 = sld [smem:[#allocation35_spill]] }
  0x73   : > { %s353_s30 = scalar_lea.vmem [#allocation4], %s3686_s20  ;;  %p3843_p10 = pnand %p2786_p7, %p4331_p13 }
  0x74   : > { %s361_s19 = sshll.u32 %s353_s30, 4  ;;  %s4377_s6 = sand.u32 1, %s3510_s14   ;;  %s362_s19 = int_to_ptr.vmem [resolvable:$true] %s361_s19 }
  0x75   : > { %s4376_s27 = scalar_select %p3843_p10, 1, 0 }
  0x76   : > { %s350_s5 = scalar_lea.sflag [#allocation5], %s4377_s6  ;;  %p4378_p3 = scmp.ne.s32.totalorder %s4360_s9, 0 }
  0x78   : > { %s3838_s12 = scalar_lea.hbm %s4375_s0, %s4374_s11  ;;  %p4379_p5 = pneg %p4378_p3 }
  0x79   : > { %s3274_s18 = scalar_lea.hbm %s3838_s12, 256  ;;  %s3279_s16 = scalar_lea.hbm %s4375_s0, 512 }
  0x7a   : > { %p3275_p12 = scmp.ne.s32.totalorder %s3838_s12, %s3274_s18  ;;  %p3280_p7 = scmp.lt.u32.totalorder %s3838_s12, %s4375_s0 }
  0x7b   : > { %p3281_p13 = scmp.lt.u32.totalorder %s3279_s16, %s3274_s18  ;;  %p3283_p1 = scmp.lt.u32.totalorder %s3274_s18, %s3838_s12 }
  0x7c   : > { %p3277_p8 = pnand %p3275_p12, %p4379_p5 }
  0x7d   : > { %p3282_p6 = por %p3281_p13, %p3280_p7 }
  0x7e   : > { %p3278_p9 = pneg %p3277_p8 }
  0x7f   : > { %p3284_p4 = por %p3283_p1, %p3282_p6 }
  0x81   : > { %p3285_p0 = pnand %p3284_p4, %p3278_p9 }
  0x83   : > { %3288 = shalt.err (!%p3285_p0)
}
  0x84   : > { %s3289_s6 = scalar_lea.vmem %s362_s19, 256  ;;  %p4380_p12 = pmov %p4379_p5 }
  0x85   : > { %p3290_p11 = scmp.ne.s32.totalorder %s362_s19, %s3289_s6  ;;  %s3537_s14 = smov [#allocation4]  }
  0x86   : > { %s3294_s3 = sshll.u32 %s3537_s14, 4  ;;  %s3295_s3 = int_to_ptr.vmem [resolvable:$false] %s3294_s3 }
  0x87   : > { %p3292_p5 = pnand %p3290_p11, %p4380_p12  ;;  %s3296_s11 = scalar_lea.vmem %s3295_s3, 512 }
  0x88   : > { %p3297_p2 = scmp.lt.s32.totalorder %s362_s19, %s3295_s3  ;;  %p3298_p10 = scmp.lt.s32.totalorder %s3296_s11, %s3289_s6 }
  0x89   : > { %p3293_p8 = pneg %p3292_p5 }
  0x8a   : > { %p3299_p7 = por %p3298_p10, %p3297_p2 }
  0x8c   : > { %p3300_p13 = pnand %p3299_p7, %p3293_p8 }
  0x8e   : > { %3303 = shalt.err (!%p3300_p13)
}
  0x8f   : > { %2793 = dma.hbm_to_vmem [thread:$0]  (!%p4378_p3), %s3838_s12, 256, %s362_s19, %s350_s5  }
  0x90   : > { %s3872_s20 = scalar_lea.hbm %s4301_s2, %s3744_s22  ;;  %s3304_s0 = scalar_lea.hbm %s4307_s8, 128 }
  0x91   : > { %p3305_p11 = scmp.ne.s32.totalorder %s4307_s8, %s3304_s0  ;;  %p4381_p2 = scmp.ne.s32.totalorder %s4376_s27, 0 }
  0x92   : > { %p3311_p6 = scmp.lt.u32.totalorder %s3304_s0, %s4307_s8 }
  0x93   : > { %p3306_p0 = pneg %p4381_p2 }
  0x95   : > { %p3307_p4 = pnand %p3306_p0, %p3305_p11 }
  0x97   : > { %p3308_p1 = pneg %p3307_p4 }
  0x99   : > { %p3313_p10 = pnand %p3311_p6, %p3308_p1 }
  0x9b   : > { %3316 = shalt.err (!%p3313_p10)
}
  0x9c   : > { %s3317_s5 = scalar_lea.vmem %s3829_s26, 128  ;;  %p3325_p5 = scmp.lt.s32.totalorder %s3829_s26, %s3829_s26 }
  0x9d   : > { %p3318_p3 = scmp.ne.s32.totalorder %s3829_s26, %s3317_s5  ;;  %p3326_p8 = scmp.lt.s32.totalorder %s3317_s5, %s3317_s5 }
  0x9f   : > { %p3320_p9 = pnand %p3318_p3, %p3306_p0  ;;  %p3327_p7 = por %p3326_p8, %p3325_p5 }
  0xa1   : > { %p3321_p12 = pneg %p3320_p9 }
  0xa3   : > { %p3328_p13 = pnand %p3327_p7, %p3321_p12 }
  0xa5   : > { %3331 = shalt.err (!%p3328_p13)
}
  0xa6   : > { %2789 = dma.hbm_to_vmem [thread:$0]  (!%p4381_p2), %s4307_s8, 128, %s3829_s26, [#allocation14]  }
  0xa7   : > { %s393_s19 = scalar_lea.vmem [#allocation9], %s3741_s24  ;;  %s3902_s27 = scalar_lea.hbm %s4303_s4, %s3744_s22 }
  0xa8   : > { %s400_s18 = sshll.u32 %s393_s19, 4  ;;  %s3332_s14 = scalar_lea.hbm %s3872_s20, 8192  ;;  %s3896_s18 = int_to_ptr.vmem [resolvable:$true] %s400_s18 }
  0xa9   : > { %p3333_p11 = scmp.ne.s32.totalorder %s3872_s20, %s3332_s14  ;;  %p4382_p0 = scmp.ne.s32.totalorder %s4365_s17, 0 }
  0xaa   : > { %s3337_s9 = scalar_lea.hbm %s4301_s2, 16384  ;;  %p3338_p2 = scmp.lt.u32.totalorder %s3872_s20, %s4301_s2 }
  0xab   : > { %p3335_p4 = pnand %p3333_p11, %p4382_p0  ;;  %p3339_p6 = scmp.lt.u32.totalorder %s3337_s9, %s3332_s14 }
  0xac   : > { %p3341_p3 = scmp.lt.u32.totalorder %s3332_s14, %s3872_s20 }
  0xad   : > { %p3336_p1 = pneg %p3335_p4  ;;  %p3340_p10 = por %p3339_p6, %p3338_p2 }
  0xaf   : > { %p3342_p9 = por %p3341_p3, %p3340_p10 }
  0xb1   : > { %p3343_p12 = pnand %p3342_p9, %p3336_p1 }
  0xb3   : > { %3346 = shalt.err (!%p3343_p12)
}
  0xb4   : > { %s3347_s22 = scalar_lea.vmem %s3896_s18, 8192  ;;  %s3538_s5 = smov [#allocation9]  }
  0xb5   : > { %p3348_p5 = scmp.ne.s32.totalorder %s3896_s18, %s3347_s22  ;;  %s3352_s12 = sshll.u32 %s3538_s5, 4  ;;  %s3353_s12 = int_to_ptr.vmem [resolvable:$false] %s3352_s12 }
  0xb6   : > { %s3354_s0 = scalar_lea.vmem %s3353_s12, 16384  ;;  %p3355_p13 = scmp.lt.s32.totalorder %s3896_s18, %s3353_s12 }
  0xb7   : > { %p3350_p8 = pnand %p3348_p5, %p4382_p0  ;;  %p3356_p11 = scmp.lt.s32.totalorder %s3354_s0, %s3347_s22 }
  0xb9   : > { %p3351_p7 = pneg %p3350_p8  ;;  %p3357_p4 = por %p3356_p11, %p3355_p13 }
  0xbb   : > { %p3358_p2 = pnand %p3357_p4, %p3351_p7 }
  0xbd   : > { %3361 = shalt.err (!%p3358_p2)
}
  0xbe   : > { %p4383_p1 = scmp.ne.s32.totalorder %s4362_s23, 0  ;;  %s4384_s19 = smov 8  }
  0xbf   : > { %s4385_s16 = smov 128   ;;  %s435_s30 = scalar_lea.vmem [#allocation12], %s3741_s24 }
  0xc0   : > { %2799 = dma.hbm_to_vmem [thread:$0]  (!%p4383_p1), %s3872_s20, 8192, %s3896_s18, %s3712_s29, %s4385_s16, %s4385_s16, %s4384_s19  }
  0xc1   : > { %s442_s14 = sshll.u32 %s435_s30, 4  ;;  %s3362_s3 = scalar_lea.hbm %s3902_s27, 8192  ;;  %s3930_s14 = int_to_ptr.vmem [resolvable:$true] %s442_s14 }
  0xc2   : > { %p3363_p6 = scmp.ne.s32.totalorder %s3902_s27, %s3362_s3  ;;  %s3367_s11 = scalar_lea.hbm %s4303_s4, 16384 }
  0xc3   : > { %p3368_p9 = scmp.lt.u32.totalorder %s3902_s27, %s4303_s4  ;;  %p3369_p12 = scmp.lt.u32.totalorder %s3367_s11, %s3362_s3 }
  0xc4   : > { %p3365_p10 = pnand %p3363_p6, %p4382_p0  ;;  %p3371_p8 = scmp.lt.u32.totalorder %s3362_s3, %s3902_s27 }
  0xc5   : > { %p3370_p5 = por %p3369_p12, %p3368_p9 }
  0xc6   : > { %p3366_p3 = pneg %p3365_p10 }
  0xc7   : > { %p3372_p7 = por %p3371_p8, %p3370_p5 }
  0xc9   : > { %p3373_p13 = pnand %p3372_p7, %p3366_p3 }
  0xcb   : > { %3376 = shalt.err (!%p3373_p13)
}
  0xcc   : > { %s3377_s29 = scalar_lea.vmem %s3930_s14, 8192  ;;  %s3539_s24 = smov [#allocation12]  }
  0xcd   : > { %p3378_p11 = scmp.ne.s32.totalorder %s3930_s14, %s3377_s29  ;;  %s3382_s20 = sshll.u32 %s3539_s24, 4  ;;  %s3383_s20 = int_to_ptr.vmem [resolvable:$false] %s3382_s20 }
  0xce   : > { %s3384_s18 = scalar_lea.vmem %s3383_s20, 16384  ;;  %p3385_p6 = scmp.lt.s32.totalorder %s3930_s14, %s3383_s20 }
  0xcf   : > { %p3380_p4 = pnand %p3378_p11, %p4382_p0  ;;  %p3386_p10 = scmp.lt.s32.totalorder %s3384_s18, %s3377_s29 }
  0xd1   : > { %p3381_p2 = pneg %p3380_p4  ;;  %p3387_p9 = por %p3386_p10, %p3385_p6 }
  0xd3   : > { %p3388_p12 = pnand %p3387_p9, %p3381_p2 }
  0xd5   : > { %3391 = shalt.err (!%p3388_p12)
}
  0xd6   : > { %s3540_s5 = smov 256   ;;  %s3541_s12 = smov 16  }
  0xd7   : > { %2805 = dma.hbm_to_vmem [thread:$0]  (!%p4383_p1), %s3902_s27, 8192, %s3930_s14, %s3757_s28, %s3540_s5, %s3540_s5, %s3541_s12  }
  0xd8   : > { %p4386_p0 = scmp.ne.s32.totalorder %s4373_s21, 0 }
  0xd9   : > { %s3957_s17 = sand.u32 (!%p4386_p0), 1, %s3506_s13   ;;  %p4387_p3 = scmp.ne.s32.totalorder (!%p4386_p0), %s4366_s25, 0 }
  0xda   : > { %454 = sbr.rel (%p4386_p0) target bundleno = 1563 (0x61b), region = 56  ;;  %s2504_s0 = sshll.u32 (!%p4386_p0), %s3957_s17, 4 }
  0xdb   : > { %s457_s19 = scalar_lea.sflag (!%p4386_p0), [#allocation5], %s3957_s17  ;;  %s3961_s16 = scalar_lea.vmem (!%p4386_p0), [#allocation4], %s2504_s0 }
  0xe1   : > { %3465 = dma.done.wait (%p4387_p3), %s457_s19, 256  }
  0xe2   : > { %3467 = vsyncadd (%p4387_p3), %s457_s19, 4294967040  ;;  %s465_s23 = sand.u32 1, %s3791_s7   ;;  %s3968_s21 = scalar_lea.vmem [#allocation7], %s2504_s0 }
  0xe3   : > { %s466_s28 = scalar_lea.sflag [#allocation8], %s465_s23 }
  0xe4   : > { %3469 = dma.done.wait (%p4387_p3), %s466_s28, 256  }
  0xe5   : > { %3471 = vsyncadd (%p4387_p3), %s466_s28, 4294967040  ;;  %s476_s27 = sand.u32 1, %s3494_s10   ;;  %p4388_p1 = scmp.ne.s32.totalorder %s4367_s1, 0 }
  0xe6   : > { %s2506_s30 = sshll.u32 %s476_s27, 9 }
  0xe7   : > { %s3975_s14 = scalar_lea.vmem [#allocation9], %s2506_s30 }
  0xe8   : > { %3473 = dma.done.wait (%p4388_p1), %s466_s28, 8192  }
  0xe9   : > { %3475 = vsyncadd (%p4388_p1), %s466_s28, 4294959104  ;;  %s484_s3 = scalar_lea.sflag [#allocation11], %s465_s23  ;;  %s3981_s6 = scalar_lea.vmem [#allocation10], %s2506_s30 }
  0xea   : > { %3477 = dma.done.wait (%p4388_p1), %s484_s3, 16384  }
  0xeb   : > { %3479 = vsyncadd (%p4388_p1), %s484_s3, 4294950912  ;;  %s3987_s25 = scalar_lea.vmem [#allocation12], %s2506_s30  ;;  %p4389_p5 = scmp.eq.s32.totalorder %s3791_s7, 0 }
  0xed   : > { %3481 = dma.done.wait (%p4389_p5), [#allocation14], 128   ;;  %p4390_p8 = pmov %p4389_p5 }
  0xee   : > { %s2510_s1 = sshll.u32 %s3957_s17, 5  ;;  %v2910_v0 = vld [vmem:[%s3981_s6 + $0x4] ss:$8 sps:$4 sm:$0xff]   ;;  %v2914_v2 = vld [vmem:[%s3981_s6] ss:$8 sps:$4 sm:$0xff]   ;;  %s2579_s7 = sshll.u32 %s3514_s15, 2 }
  0xef   : > { %3483 = vsyncadd (%p4390_p8), [#allocation14], 4294967168  ;;  %v2912_v1 = vld [vmem:[%s3975_s14 + $0x4] ss:$8 sps:$4 sm:$0xff]   ;;  %968 = vmatprep.subr.bf16.mxu0 %v2910_v0  ;;  %v2915_v3 = vld [vmem:[%s3975_s14] ss:$8 sps:$4 sm:$0xff]  }
  0xf0   : > { %1471 = vmatprep.subr.bf16.mxu1 %v2912_v1  ;;  %v2916_v4 = vld [vmem:[%s3981_s6 + $0x14] ss:$8 sps:$4 sm:$0xff]   ;;  %969 = vmatpush1.bf16.msra.mxu0 %v2914_v2  ;;  %v2920_v6 = vld [vmem:[%s3981_s6 + $0x10] ss:$8 sps:$4 sm:$0xff]   ;;  %v2922_v8 = vld [vmem:[%s3981_s6 + $0x24] ss:$8 sps:$4 sm:$0xff]  }
  0xf1   : > { %1472 = vmatpush1.bf16.msra.mxu1 %v2915_v3  ;;  %v2918_v5 = vld [vmem:[%s3975_s14 + $0x14] ss:$8 sps:$4 sm:$0xff]   ;;  %970 = vmatprep.subr.bf16.mxu0 %v2916_v4  ;;  %v2921_v7 = vld [vmem:[%s3975_s14 + $0x10] ss:$8 sps:$4 sm:$0xff]   ;;  %v2924_v9 = vld [vmem:[%s3975_s14 + $0x24] ss:$8 sps:$4 sm:$0xff]  }
  0xf2   : > { %1473 = vmatprep.subr.bf16.mxu1 %v2918_v5  ;;  %v2926_v10 = vld [vmem:[%s3981_s6 + $0x20] ss:$8 sps:$4 sm:$0xff]   ;;  %v2928_v12 = vld [vmem:[%s3981_s6 + $0x34] ss:$8 sps:$4 sm:$0xff]   ;;  %v2932_v14 = vld [vmem:[%s3981_s6 + $0x30] ss:$8 sps:$4 sm:$0xff]  }
  0xf3   : > { %v2927_v11 = vld [vmem:[%s3975_s14 + $0x20] ss:$8 sps:$4 sm:$0xff]   ;;  %v2930_v13 = vld [vmem:[%s3975_s14 + $0x34] ss:$8 sps:$4 sm:$0xff]   ;;  %v2933_v15 = vld [vmem:[%s3975_s14 + $0x30] ss:$8 sps:$4 sm:$0xff]  }
  0xf4   : > { %971 = vmatpush1.bf16.msra.mxu0 %v2920_v6  ;;  %v2934_v16 = vld [vmem:[%s3981_s6 + $0x44] ss:$8 sps:$4 sm:$0xff]   ;;  %v2938_v18 = vld [vmem:[%s3981_s6 + $0x40] ss:$8 sps:$4 sm:$0xff]   ;;  %v2940_v20 = vld [vmem:[%s3981_s6 + $0x54] ss:$8 sps:$4 sm:$0xff]  }
  0xf5   : > { %1474 = vmatpush1.bf16.msra.mxu1 %v2921_v7  ;;  %972 = vmatprep.subr.bf16.mxu0 %v2922_v8  ;;  %v2936_v17 = vld [vmem:[%s3975_s14 + $0x44] ss:$8 sps:$4 sm:$0xff]   ;;  %v2939_v19 = vld [vmem:[%s3975_s14 + $0x40] ss:$8 sps:$4 sm:$0xff]   ;;  %v2942_v21 = vld [vmem:[%s3975_s14 + $0x54] ss:$8 sps:$4 sm:$0xff]  }
  0xf6   : > { %1475 = vmatprep.subr.bf16.mxu1 %v2924_v9  ;;  %v2944_v22 = vld [vmem:[%s3981_s6 + $0x50] ss:$8 sps:$4 sm:$0xff]   ;;  %v2946_v24 = vld [vmem:[%s3981_s6 + $0x64] ss:$8 sps:$4 sm:$0xff]   ;;  %v2950_v26 = vld [vmem:[%s3981_s6 + $0x60] ss:$8 sps:$4 sm:$0xff]  }
  0xf7   : > { %v2945_v23 = vld [vmem:[%s3975_s14 + $0x50] ss:$8 sps:$4 sm:$0xff]   ;;  %v2948_v25 = vld [vmem:[%s3975_s14 + $0x64] ss:$8 sps:$4 sm:$0xff]   ;;  %v2951_v27 = vld [vmem:[%s3975_s14 + $0x60] ss:$8 sps:$4 sm:$0xff]  }
  0xf8   : > { %973 = vmatpush1.bf16.msra.mxu0 %v2926_v10  ;;  %v2952_v28 = vld [vmem:[%s3981_s6 + $0x74] ss:$8 sps:$4 sm:$0xff]   ;;  %v2956_v30 = vld [vmem:[%s3981_s6 + $0x70] ss:$8 sps:$4 sm:$0xff]   ;;  %v2958_v32 = vld [vmem:[%s3981_s6 + $0x84] ss:$8 sps:$4 sm:$0xff]  }
  0xf9   : > { %1476 = vmatpush1.bf16.msra.mxu1 %v2927_v11  ;;  %974 = vmatprep.subr.bf16.mxu0 %v2928_v12  ;;  %v2954_v29 = vld [vmem:[%s3975_s14 + $0x74] ss:$8 sps:$4 sm:$0xff]   ;;  %v2957_v31 = vld [vmem:[%s3975_s14 + $0x70] ss:$8 sps:$4 sm:$0xff]   ;;  %v2960_v33 = vld [vmem:[%s3975_s14 + $0x84] ss:$8 sps:$4 sm:$0xff]  }
  0xfa   : > { %1477 = vmatprep.subr.bf16.mxu1 %v2930_v13  ;;  %v2962_v34 = vld [vmem:[%s3981_s6 + $0x80] ss:$8 sps:$4 sm:$0xff]   ;;  %v2964_v36 = vld [vmem:[%s3981_s6 + $0x94] ss:$8 sps:$4 sm:$0xff]   ;;  %v2968_v38 = vld [vmem:[%s3981_s6 + $0x90] ss:$8 sps:$4 sm:$0xff]  }
  0xfb   : > { %v2963_v35 = vld [vmem:[%s3975_s14 + $0x80] ss:$8 sps:$4 sm:$0xff]   ;;  %v2966_v37 = vld [vmem:[%s3975_s14 + $0x94] ss:$8 sps:$4 sm:$0xff]   ;;  %v2969_v39 = vld [vmem:[%s3975_s14 + $0x90] ss:$8 sps:$4 sm:$0xff]  }
  0xfc   : > { %975 = vmatpush1.bf16.msra.mxu0 %v2932_v14  ;;  %v2970_v40 = vld [vmem:[%s3981_s6 + $0xa4] ss:$8 sps:$4 sm:$0xff]   ;;  %v2974_v42 = vld [vmem:[%s3981_s6 + $0xa0] ss:$8 sps:$4 sm:$0xff]   ;;  %v2976_v44 = vld [vmem:[%s3981_s6 + $0xb4] ss:$8 sps:$4 sm:$0xff]  }
  0xfd   : > { %1478 = vmatpush1.bf16.msra.mxu1 %v2933_v15  ;;  %976 = vmatprep.subr.bf16.mxu0 %v2934_v16  ;;  %v2972_v41 = vld [vmem:[%s3975_s14 + $0xa4] ss:$8 sps:$4 sm:$0xff]   ;;  %v2975_v43 = vld [vmem:[%s3975_s14 + $0xa0] ss:$8 sps:$4 sm:$0xff]   ;;  %v2978_v45 = vld [vmem:[%s3975_s14 + $0xb4] ss:$8 sps:$4 sm:$0xff]  }
  0xfe   : > { %1479 = vmatprep.subr.bf16.mxu1 %v2936_v17  ;;  %v568_v46 = vld [vmem:[%s3961_s16] sm:$0xff]  ;;  %s3543_s9 = smov 64   ;;  %vm3544_vm0 = vmmov 0   ;;  %s1063_s11 = scalar_lea.vmem [#allocation3], %s2579_s7  ;;  %vm1615_vm1 = vcmask 1043456   ;;  %vm1601_vm2 = vcmask 64512  }
  0xff   : > { %v2980_v47 = vld [vmem:[%s3981_s6 + $0xb0] ss:$8 sps:$4 sm:$0xff]   ;;  %v2512_v48 = vcombine.high %v568_v46, %v568_v46  ;;  %v2982_v51 = vld [vmem:[%s3981_s6 + $0xc4] ss:$8 sps:$4 sm:$0xff]   ;;  %v2986_v54 = vld [vmem:[%s3981_s6 + $0xc0] ss:$8 sps:$4 sm:$0xff]   ;;  %v2511_v6 = vcombine.low %v568_v46, %v568_v46 }
 0x100   : > { %977 = vmatpush1.bf16.msra.mxu0 %v2938_v18  ;;  %v2981_v49 = vld [vmem:[%s3975_s14 + $0xb0] ss:$8 sps:$4 sm:$0xff]   ;;  %v2984_v52 = vld [vmem:[%s3975_s14 + $0xc4] ss:$8 sps:$4 sm:$0xff]   ;;  %v2987_v55 = vld [vmem:[%s3975_s14 + $0xc0] ss:$8 sps:$4 sm:$0xff]  }
 0x101   : > { %1480 = vmatpush1.bf16.msra.mxu1 %v2939_v19  ;;  %978 = vmatprep.subr.bf16.mxu0 %v2940_v20  ;;  %v1071_v50 = vld [vmem:[%s3968_s21] sm:$0xff]  ;;  %s4391_s29 = sld [smem:[#allocation38_spill]]  ;;  %s4392_s18 = sld [smem:[#allocation39_spill]] }
 0x102   : > { %1481 = vmatprep.subr.bf16.mxu1 %v2942_v21  ;;  %v2584_v53 = vcombine.high %v1071_v50, %v1071_v50  ;;  %1000 = vmatprep.mubr.bf16.mxu0 %v2512_v48  ;;  %v2988_v56 = vld [vmem:[%s3981_s6 + $0xd4] ss:$8 sps:$4 sm:$0xff]   ;;  %v2992_v58 = vld [vmem:[%s3981_s6 + $0xd0] ss:$8 sps:$4 sm:$0xff]   ;;  %v2994_v60 = vld [vmem:[%s3981_s6 + $0xe4] ss:$8 sps:$4 sm:$0xff]   ;;  %v2583_v7 = vcombine.low %v1071_v50, %v1071_v50 }
 0x103   : > { %v2990_v57 = vld [vmem:[%s3975_s14 + $0xd4] ss:$8 sps:$4 sm:$0xff]   ;;  %v2993_v59 = vld [vmem:[%s3975_s14 + $0xd0] ss:$8 sps:$4 sm:$0xff]   ;;  %v2996_v61 = vld [vmem:[%s3975_s14 + $0xe4] ss:$8 sps:$4 sm:$0xff]  }
 0x104   : > { %979 = vmatpush1.bf16.msra.mxu0 %v2944_v22  ;;  %1503 = vmatprep.mubr.bf16.mxu1 %v2584_v53  ;;  %v2998_v62 = vld [vmem:[%s3981_s6 + $0xe0] ss:$8 sps:$4 sm:$0xff]   ;;  %v3000_v0 = vld [vmem:[%s3981_s6 + $0xf4] ss:$8 sps:$4 sm:$0xff]   ;;  %v3004_v2 = vld [vmem:[%s3981_s6 + $0xf0] ss:$8 sps:$4 sm:$0xff]  }
 0x105   : > { %1482 = vmatpush1.bf16.msra.mxu1 %v2945_v23  ;;  %980 = vmatprep.subr.bf16.mxu0 %v2946_v24  ;;  %v2999_v63 = vld [vmem:[%s3975_s14 + $0xe0] ss:$8 sps:$4 sm:$0xff]   ;;  %v3002_v1 = vld [vmem:[%s3975_s14 + $0xf4] ss:$8 sps:$4 sm:$0xff]   ;;  %v3005_v3 = vld [vmem:[%s3975_s14 + $0xf0] ss:$8 sps:$4 sm:$0xff]  }
 0x106   : > { %1483 = vmatprep.subr.bf16.mxu1 %v2948_v25  ;;  %v3010_v4 = vld [vmem:[%s3981_s6 + $0x104] ss:$8 sps:$4 sm:$0xff]   ;;  %v3008_v8 = vld [vmem:[%s3981_s6 + $0x100] ss:$8 sps:$4 sm:$0xff]   ;;  %v3018_v10 = vld [vmem:[%s3981_s6 + $0x114] ss:$8 sps:$4 sm:$0xff]  }
 0x107   : > { %v3015_v5 = vld [vmem:[%s3975_s14 + $0x104] ss:$8 sps:$4 sm:$0xff]   ;;  %v3013_v9 = vld [vmem:[%s3975_s14 + $0x100] ss:$8 sps:$4 sm:$0xff]   ;;  %v3021_v11 = vld [vmem:[%s3975_s14 + $0x114] ss:$8 sps:$4 sm:$0xff]  }
 0x108   : > { %981 = vmatpush1.bf16.msra.mxu0 %v2950_v26  ;;  %v3016_v12 = vld [vmem:[%s3981_s6 + $0x110] ss:$8 sps:$4 sm:$0xff]   ;;  %v3024_v14 = vld [vmem:[%s3981_s6 + $0x124] ss:$8 sps:$4 sm:$0xff]   ;;  %v3022_v16 = vld [vmem:[%s3981_s6 + $0x120] ss:$8 sps:$4 sm:$0xff]  }
 0x109   : > { %1484 = vmatpush1.bf16.msra.mxu1 %v2951_v27  ;;  %982 = vmatprep.subr.bf16.mxu0 %v2952_v28  ;;  %v3019_v13 = vld [vmem:[%s3975_s14 + $0x110] ss:$8 sps:$4 sm:$0xff]   ;;  %v3027_v15 = vld [vmem:[%s3975_s14 + $0x124] ss:$8 sps:$4 sm:$0xff]   ;;  %v3025_v17 = vld [vmem:[%s3975_s14 + $0x120] ss:$8 sps:$4 sm:$0xff]  }
 0x10a   : > { %1485 = vmatprep.subr.bf16.mxu1 %v2954_v29  ;;  %v3030_v18 = vld [vmem:[%s3981_s6 + $0x134] ss:$8 sps:$4 sm:$0xff]   ;;  %v3028_v20 = vld [vmem:[%s3981_s6 + $0x130] ss:$8 sps:$4 sm:$0xff]   ;;  %v3036_v22 = vld [vmem:[%s3981_s6 + $0x144] ss:$8 sps:$4 sm:$0xff]  }
 0x10b   : > { %v3033_v19 = vld [vmem:[%s3975_s14 + $0x134] ss:$8 sps:$4 sm:$0xff]   ;;  %v3031_v21 = vld [vmem:[%s3975_s14 + $0x130] ss:$8 sps:$4 sm:$0xff]   ;;  %v3039_v23 = vld [vmem:[%s3975_s14 + $0x144] ss:$8 sps:$4 sm:$0xff]  }
 0x10c   : > { %983 = vmatpush1.bf16.msra.mxu0 %v2956_v30  ;;  %v3034_v24 = vld [vmem:[%s3981_s6 + $0x140] ss:$8 sps:$4 sm:$0xff]   ;;  %v3042_v26 = vld [vmem:[%s3981_s6 + $0x154] ss:$8 sps:$4 sm:$0xff]   ;;  %v3040_v28 = vld [vmem:[%s3981_s6 + $0x150] ss:$8 sps:$4 sm:$0xff]  }
 0x10d   : > { %1486 = vmatpush1.bf16.msra.mxu1 %v2957_v31  ;;  %984 = vmatprep.subr.bf16.mxu0 %v2958_v32  ;;  %v3037_v25 = vld [vmem:[%s3975_s14 + $0x140] ss:$8 sps:$4 sm:$0xff]   ;;  %v3045_v27 = vld [vmem:[%s3975_s14 + $0x154] ss:$8 sps:$4 sm:$0xff]   ;;  %v3043_v29 = vld [vmem:[%s3975_s14 + $0x150] ss:$8 sps:$4 sm:$0xff]  }
 0x10e   : > { %1487 = vmatprep.subr.bf16.mxu1 %v2960_v33  ;;  %v3048_v30 = vld [vmem:[%s3981_s6 + $0x164] ss:$8 sps:$4 sm:$0xff]   ;;  %v3046_v32 = vld [vmem:[%s3981_s6 + $0x160] ss:$8 sps:$4 sm:$0xff]   ;;  %v3066_v46 = vld [vmem:[%s3981_s6 + $0x194] ss:$8 sps:$4 sm:$0xff]  }
 0x10f   : > { %v3051_v31 = vld [vmem:[%s3975_s14 + $0x164] ss:$8 sps:$4 sm:$0xff]   ;;  %v3049_v33 = vld [vmem:[%s3975_s14 + $0x160] ss:$8 sps:$4 sm:$0xff]   ;;  %v3064_v48 = vld [vmem:[%s3981_s6 + $0x190] ss:$8 sps:$4 sm:$0xff]  }
 0x110   : > { %985 = vmatpush1.bf16.msra.mxu0 %v2962_v34  ;;  %v4089_v34 = vld [vmem:[%s3961_s16 + $0x8] sm:$0xff]  ;;  %s1059_s5 = scalar_lea.vmem [#allocation2], %s2579_s7  ;;  %s4393_s19 = sld [smem:[#allocation40_spill]] }
 0x111   : > { %1488 = vmatpush1.bf16.msra.mxu1 %v2963_v35  ;;  %986 = vmatprep.subr.bf16.mxu0 %v2964_v36  ;;  %v4092_v35 = vld [vmem:[%s3968_s21 + $0x8] sm:$0xff]  ;;  %s558_s16 = scalar_lea.vmem [#allocation15], %s2510_s1  ;;  %p2717_p7 = scmp.ne.s32.totalorder %s3514_s15, 0 }
 0x112   : > { %1489 = vmatprep.subr.bf16.mxu1 %v2966_v37  ;;  %v3054_v36 = vld [vmem:[%s3981_s6 + $0x174] ss:$8 sps:$4 sm:$0xff]   ;;  %v3072_v50 = vld [vmem:[%s3981_s6 + $0x1a4] ss:$8 sps:$4 sm:$0xff]   ;;  %v3073_v53 = vld [vmem:[%s3975_s14 + $0x1a0] ss:$8 sps:$4 sm:$0xff]  }
 0x113   : > { %v3057_v37 = vld [vmem:[%s3975_s14 + $0x174] ss:$8 sps:$4 sm:$0xff]  }
 0x114   : > { %987 = vmatpush1.bf16.msra.mxu0 %v2968_v38  ;;  %v2514_v38 = vcombine.high %v4089_v34, %v4089_v34 }
 0x115   : > { %1490 = vmatpush1.bf16.msra.mxu1 %v2969_v39  ;;  %988 = vmatprep.subr.bf16.mxu0 %v2970_v40  ;;  %v2586_v39 = vcombine.high %v4092_v35, %v4092_v35  ;;  %v3052_v40 = vld [vmem:[%s3981_s6 + $0x170] ss:$8 sps:$4 sm:$0xff]  }
 0x116   : > { %1491 = vmatprep.subr.bf16.mxu1 %v2972_v41  ;;  %v3055_v41 = vld [vmem:[%s3975_s14 + $0x170] ss:$8 sps:$4 sm:$0xff]  }
 0x118   : > { %989 = vmatpush1.bf16.msra.mxu0 %v2974_v42  ;;  %v3060_v42 = vld [vmem:[%s3981_s6 + $0x184] ss:$8 sps:$4 sm:$0xff]  }
 0x119   : > { %1492 = vmatpush1.bf16.msra.mxu1 %v2975_v43  ;;  %990 = vmatprep.subr.bf16.mxu0 %v2976_v44  ;;  %v3063_v43 = vld [vmem:[%s3975_s14 + $0x184] ss:$8 sps:$4 sm:$0xff]   ;;  %v3058_v44 = vld [vmem:[%s3981_s6 + $0x180] ss:$8 sps:$4 sm:$0xff]  }
 0x11a   : > { %1493 = vmatprep.subr.bf16.mxu1 %v2978_v45  ;;  %v3061_v45 = vld [vmem:[%s3975_s14 + $0x180] ss:$8 sps:$4 sm:$0xff]  }
 0x11c   : > { %991 = vmatpush1.bf16.msra.mxu0 %v2980_v47  ;;  %v3069_v47 = vld [vmem:[%s3975_s14 + $0x194] ss:$8 sps:$4 sm:$0xff]  }
 0x11d   : > { %1494 = vmatpush1.bf16.msra.mxu1 %v2981_v49  ;;  %992 = vmatprep.subr.bf16.mxu0 %v2982_v51  ;;  %v3067_v49 = vld [vmem:[%s3975_s14 + $0x190] ss:$8 sps:$4 sm:$0xff]   ;;  %v3075_v51 = vld [vmem:[%s3975_s14 + $0x1a4] ss:$8 sps:$4 sm:$0xff]  }
 0x11e   : > { %1495 = vmatprep.subr.bf16.mxu1 %v2984_v52  ;;  %v3070_v52 = vld [vmem:[%s3981_s6 + $0x1a0] ss:$8 sps:$4 sm:$0xff]  }
 0x120   : > { %993 = vmatpush1.bf16.msra.mxu0 %v2986_v54  ;;  %v3078_v54 = vld [vmem:[%s3981_s6 + $0x1b4] ss:$8 sps:$4 sm:$0xff]  }
 0x121   : > { %1496 = vmatpush1.bf16.msra.mxu1 %v2987_v55  ;;  %994 = vmatprep.subr.bf16.mxu0 %v2988_v56  ;;  %v3081_v55 = vld [vmem:[%s3975_s14 + $0x1b4] ss:$8 sps:$4 sm:$0xff]   ;;  %v3076_v56 = vld [vmem:[%s3981_s6 + $0x1b0] ss:$8 sps:$4 sm:$0xff]  }
 0x122   : > { %1497 = vmatprep.subr.bf16.mxu1 %v2990_v57  ;;  %v3079_v57 = vld [vmem:[%s3975_s14 + $0x1b0] ss:$8 sps:$4 sm:$0xff]  }
 0x124   : > { %995 = vmatpush1.bf16.msra.mxu0 %v2992_v58  ;;  %v3084_v58 = vld [vmem:[%s3981_s6 + $0x1c4] ss:$8 sps:$4 sm:$0xff]  }
 0x125   : > { %1498 = vmatpush1.bf16.msra.mxu1 %v2993_v59  ;;  %996 = vmatprep.subr.bf16.mxu0 %v2994_v60  ;;  %v3087_v59 = vld [vmem:[%s3975_s14 + $0x1c4] ss:$8 sps:$4 sm:$0xff]   ;;  %v3082_v60 = vld [vmem:[%s3981_s6 + $0x1c0] ss:$8 sps:$4 sm:$0xff]  }
 0x126   : > { %1499 = vmatprep.subr.bf16.mxu1 %v2996_v61  ;;  %v3085_v61 = vld [vmem:[%s3975_s14 + $0x1c0] ss:$8 sps:$4 sm:$0xff]  }
 0x128   : > { %997 = vmatpush1.bf16.msra.mxu0 %v2998_v62  ;;  %v3090_v62 = vld [vmem:[%s3981_s6 + $0x1d4] ss:$8 sps:$4 sm:$0xff]  }
 0x129   : > { %1500 = vmatpush1.bf16.msra.mxu1 %v2999_v63  ;;  %998 = vmatprep.subr.bf16.mxu0 %v3000_v0  ;;  %v3093_v63 = vld [vmem:[%s3975_s14 + $0x1d4] ss:$8 sps:$4 sm:$0xff]   ;;  %v3088_v0 = vld [vmem:[%s3981_s6 + $0x1d0] ss:$8 sps:$4 sm:$0xff]  }
 0x12a   : > { %1501 = vmatprep.subr.bf16.mxu1 %v3002_v1  ;;  %v3091_v1 = vld [vmem:[%s3975_s14 + $0x1d0] ss:$8 sps:$4 sm:$0xff]  }
 0x12c   : > { %999 = vmatpush1.bf16.msra.mxu0 %v3004_v2  ;;  %v3096_v2 = vld [vmem:[%s3981_s6 + $0x1e4] ss:$8 sps:$4 sm:$0xff]  }
 0x12d   : > { %1502 = vmatpush1.bf16.msra.mxu1 %v3005_v3  ;;  %1009 = vmatprep.subr.bf16.mxu0 %v3010_v4  ;;  %v3099_v3 = vld [vmem:[%s3975_s14 + $0x1e4] ss:$8 sps:$4 sm:$0xff]   ;;  %v3094_v4 = vld [vmem:[%s3981_s6 + $0x1e0] ss:$8 sps:$4 sm:$0xff]  }
 0x12e   : > { %1512 = vmatprep.subr.bf16.mxu1 %v3015_v5  ;;  %v3097_v5 = vld [vmem:[%s3975_s14 + $0x1e0] ss:$8 sps:$4 sm:$0xff]  }
 0x12f   : > { %1001 = vmatmul.mubr.bf16.vlgmr.msra.gmra.mrb[0].mxu0 %v2511_v6  ;;  %v3102_v6 = vld [vmem:[%s3981_s6 + $0x1f4] ss:$8 sps:$4 sm:$0xff]  }
 0x130   : > { %1504 = vmatmul.mubr.bf16.vlgmr.msra.gmra.mrb[0].mxu1 %v2583_v7  ;;  %1010 = vmatpush1.bf16.msra.mxu0 %v3008_v8  ;;  %v3105_v7 = vld [vmem:[%s3975_s14 + $0x1f4] ss:$8 sps:$4 sm:$0xff]   ;;  %v3100_v8 = vld [vmem:[%s3981_s6 + $0x1f0] ss:$8 sps:$4 sm:$0xff]  }
 0x131   : > { %1513 = vmatpush1.bf16.msra.mxu1 %v3013_v9  ;;  %1011 = vmatprep.subr.bf16.mxu0 %v3018_v10  ;;  %v3103_v9 = vld [vmem:[%s3975_s14 + $0x1f0] ss:$8 sps:$4 sm:$0xff]   ;;  %v2513_v10 = vcombine.low %v4089_v34, %v4089_v34 }
 0x132   : > { %1514 = vmatprep.subr.bf16.mxu1 %v3021_v11  ;;  %1041 = vmatprep.mubr.bf16.mxu0 %v2514_v38  ;;  %v2585_v11 = vcombine.low %v4092_v35, %v4092_v35 }
 0x133   : > { %1544 = vmatprep.mubr.bf16.mxu1 %v2586_v39 }
 0x134   : > { %1012 = vmatpush1.bf16.msra.mxu0 %v3016_v12  ;;  %v3542_v12 = vmov 0.0  }
 0x135   : > { %1515 = vmatpush1.bf16.msra.mxu1 %v3019_v13  ;;  %1013 = vmatprep.subr.bf16.mxu0 %v3024_v14 }
 0x136   : > { %1516 = vmatprep.subr.bf16.mxu1 %v3027_v15 }
 0x138   : > { %1014 = vmatpush1.bf16.msra.mxu0 %v3022_v16 }
 0x139   : > { %1517 = vmatpush1.bf16.msra.mxu1 %v3025_v17  ;;  %1015 = vmatprep.subr.bf16.mxu0 %v3030_v18 }
 0x13a   : > { %1518 = vmatprep.subr.bf16.mxu1 %v3033_v19 }
 0x13c   : > { %1016 = vmatpush1.bf16.msra.mxu0 %v3028_v20 }
 0x13d   : > { %1519 = vmatpush1.bf16.msra.mxu1 %v3031_v21  ;;  %1017 = vmatprep.subr.bf16.mxu0 %v3036_v22 }
 0x13e   : > { %1520 = vmatprep.subr.bf16.mxu1 %v3039_v23 }
 0x140   : > { %1018 = vmatpush1.bf16.msra.mxu0 %v3034_v24  ;;  %v1050_v24 = vld [vmem:[%s4391_s29] sm:$0xff] }
 0x141   : > { %1521 = vmatpush1.bf16.msra.mxu1 %v3037_v25  ;;  %1019 = vmatprep.subr.bf16.mxu0 %v3042_v26  ;;  %v1051_v25 = vld [vmem:[%s4392_s18] sm:$0xff] }
 0x142   : > { %1522 = vmatprep.subr.bf16.mxu1 %v3045_v27 }
 0x144   : > { %1020 = vmatpush1.bf16.msra.mxu0 %v3040_v28 }
 0x145   : > { %1523 = vmatpush1.bf16.msra.mxu1 %v3043_v29  ;;  %1021 = vmatprep.subr.bf16.mxu0 %v3048_v30 }
 0x146   : > { %1524 = vmatprep.subr.bf16.mxu1 %v3051_v31 }
 0x148   : > { %1022 = vmatpush1.bf16.msra.mxu0 %v3046_v32  ;;  %v1553_v32 = vld [vmem:[%s4393_s19] sm:$0xff] }
 0x149   : > { %1525 = vmatpush1.bf16.msra.mxu1 %v3049_v33  ;;  %1023 = vmatprep.subr.bf16.mxu0 %v3054_v36  ;;  %v1554_v33 = vld [vmem:[#allocation13] sm:$0xff] }
 0x14a   : > { %1526 = vmatprep.subr.bf16.mxu1 %v3057_v37 }
 0x14c   : > { %1024 = vmatpush1.bf16.msra.mxu0 %v3052_v40 }
 0x14d   : > { %1527 = vmatpush1.bf16.msra.mxu1 %v3055_v41  ;;  %1025 = vmatprep.subr.bf16.mxu0 %v3060_v42 }
 0x14e   : > { %1528 = vmatprep.subr.bf16.mxu1 %v3063_v43 }
 0x150   : > { %1026 = vmatpush1.bf16.msra.mxu0 %v3058_v44 }
 0x151   : > { %1529 = vmatpush1.bf16.msra.mxu1 %v3061_v45  ;;  %1027 = vmatprep.subr.bf16.mxu0 %v3066_v46 }
 0x152   : > { %1530 = vmatprep.subr.bf16.mxu1 %v3069_v47 }
 0x154   : > { %1028 = vmatpush1.bf16.msra.mxu0 %v3064_v48 }
 0x155   : > { %1531 = vmatpush1.bf16.msra.mxu1 %v3067_v49  ;;  %1029 = vmatprep.subr.bf16.mxu0 %v3072_v50 }
 0x156   : > { %1532 = vmatprep.subr.bf16.mxu1 %v3075_v51 }
 0x158   : > { %1030 = vmatpush1.bf16.msra.mxu0 %v3070_v52 }
 0x159   : > { %1533 = vmatpush1.bf16.msra.mxu1 %v3073_v53  ;;  %1031 = vmatprep.subr.bf16.mxu0 %v3078_v54 }
 0x15a   : > { %1534 = vmatprep.subr.bf16.mxu1 %v3081_v55 }
 0x15c   : > { %1032 = vmatpush1.bf16.msra.mxu0 %v3076_v56 }
 0x15d   : > { %1535 = vmatpush1.bf16.msra.mxu1 %v3079_v57  ;;  %1033 = vmatprep.subr.bf16.mxu0 %v3084_v58 }
 0x15e   : > { %1536 = vmatprep.subr.bf16.mxu1 %v3087_v59 }
 0x160   : > { %1034 = vmatpush1.bf16.msra.mxu0 %v3082_v60 }
 0x161   : > { %1537 = vmatpush1.bf16.msra.mxu1 %v3085_v61  ;;  %1035 = vmatprep.subr.bf16.mxu0 %v3090_v62 }
 0x162   : > { %1538 = vmatprep.subr.bf16.mxu1 %v3093_v63 }
 0x164   : > { %1036 = vmatpush1.bf16.msra.mxu0 %v3088_v0 }
 0x165   : > { %1539 = vmatpush1.bf16.msra.mxu1 %v3091_v1  ;;  %1037 = vmatprep.subr.bf16.mxu0 %v3096_v2  ;;  %v3110_v2 = vld [vmem:[%s3987_s25] ss:$16 sps:$4 sm:$0xff]  }
 0x166   : > { %1540 = vmatprep.subr.bf16.mxu1 %v3099_v3  ;;  %v3112_v3 = vld [vmem:[%s3987_s25 + $0x4] ss:$16 sps:$4 sm:$0xff]  }
 0x168   : > { %1038 = vmatpush1.bf16.msra.mxu0 %v3094_v4  ;;  %v3113_v4 = vld [vmem:[%s3987_s25 + $0x8] ss:$16 sps:$4 sm:$0xff]  }
 0x169   : > { %1541 = vmatpush1.bf16.msra.mxu1 %v3097_v5  ;;  %1039 = vmatprep.subr.bf16.mxu0 %v3102_v6  ;;  %v3115_v5 = vld [vmem:[%s3987_s25 + $0xc] ss:$16 sps:$4 sm:$0xff]   ;;  %v3118_v6 = vld [vmem:[%s3987_s25 + $0x24] ss:$16 sps:$4 sm:$0xff]  }
 0x16a   : > { %1542 = vmatprep.subr.bf16.mxu1 %v3105_v7  ;;  %v3121_v7 = vld [vmem:[%s3987_s25 + $0x2c] ss:$16 sps:$4 sm:$0xff]  }
 0x16c   : > { %1040 = vmatpush1.bf16.msra.mxu0 %v3100_v8  ;;  %v3116_v8 = vld [vmem:[%s3987_s25 + $0x20] ss:$16 sps:$4 sm:$0xff]  }
 0x16d   : > { %1543 = vmatpush1.bf16.msra.mxu1 %v3103_v9  ;;  %2738 = vmatprep.subr.bf16.mxu0 %v3542_v12  ;;  %v3119_v9 = vld [vmem:[%s3987_s25 + $0x28] ss:$16 sps:$4 sm:$0xff]  }
 0x16e   : > { %2744 = vmatprep.subr.bf16.mxu1 %v3542_v12 }
 0x16f   : > { %1042 = vmatmul.mubr.bf16.vlgmr.msra.gmra.mrb[0].mxu0 %v2513_v10  ;;  %v3124_v10 = vld [vmem:[%s3987_s25 + $0x44] ss:$16 sps:$4 sm:$0xff]  }
 0x170   : > { %1545 = vmatmul.mubr.bf16.vlgmr.msra.gmra.mrb[0].mxu1 %v2585_v11  ;;  %2740 = vmatprep.mubr.msk.bf16.mxu0 %vm3544_vm0, %v3542_v12  ;;  %v3127_v11 = vld [vmem:[%s3987_s25 + $0x4c] ss:$16 sps:$4 sm:$0xff]  }
 0x171   : > { %2746 = vmatprep.mubr.msk.bf16.mxu1 %vm3544_vm0, %v3542_v12 }
 0x242   : > { %v1043_v13 = vpop.f32.mrb[0].mxu0 }
 0x243   : > { %v1546_v14 = vpop.f32.mrb[0].mxu1  ;;  %1053 = vrot.lane.b32.xlu0 %v1043_v13, %s3543_s9  ;;  %v1045_v16 = vpop.f32.mrb[1].mxu0  ;;  %v1052_v27 = vmul.f32 %v1050_v24, %v1043_v13  ;;  %v3125_v13 = vld [vmem:[%s3987_s25 + $0x48] ss:$16 sps:$4 sm:$0xff]   ;;  %v3140_v24 = vld [vmem:[%s3987_s25 + $0xa0] ss:$16 sps:$4 sm:$0xff]  }
 0x244   : > { %v1548_v15 = vpop.f32.mrb[1].mxu1  ;;  %v1061_v17 = vpack.c.bf16 %v1045_v16, %v1045_v16  ;;  %v1047_v18 = vpop.f32.mrb[2].mxu0  ;;  %v1555_v35 = vmul.f32 %v1553_v32, %v1546_v14  ;;  %v3128_v16 = vld [vmem:[%s3987_s25 + $0x60] ss:$16 sps:$4 sm:$0xff]  }
 0x245   : > { %1663 = vrot.lane.b32.xlu1 %v1548_v15, %s3543_s9  ;;  %v1550_v19 = vpop.f32.mrb[2].mxu1  ;;  %v1048_v20 = vpop.f32.mrb[3].mxu0  ;;  %v1662_v41 = vmul.f32 %v1553_v32, %v1548_v15  ;;  %v3133_v15 = vld [vmem:[%s3987_s25 + $0x6c] ss:$16 sps:$4 sm:$0xff]   ;;  %v3136_v18 = vld [vmem:[%s3987_s25 + $0x84] ss:$16 sps:$4 sm:$0xff]  }
 0x246   : > { %v1551_v21 = vpop.f32.mrb[3].mxu1  ;;  %1064 = vst [vmem:[%s1063_s11] sm:$0xf] %v1061_v17  ;;  %v3131_v17 = vld [vmem:[%s3987_s25 + $0x68] ss:$16 sps:$4 sm:$0xff]   ;;  %v3139_v19 = vld [vmem:[%s3987_s25 + $0x8c] ss:$16 sps:$4 sm:$0xff]  }
 0x247   : > { %1556 = vrot.lane.b32.xlu0 %v1546_v14, %s3543_s9  ;;  %v3130_v14 = vld [vmem:[%s3987_s25 + $0x64] ss:$16 sps:$4 sm:$0xff]   ;;  %v3134_v20 = vld [vmem:[%s3987_s25 + $0x80] ss:$16 sps:$4 sm:$0xff]   ;;  %v3137_v21 = vld [vmem:[%s3987_s25 + $0x88] ss:$16 sps:$4 sm:$0xff]  }
 0x248   : > { %v3152_v32 = vld [vmem:[%s3987_s25 + $0xe0] ss:$16 sps:$4 sm:$0xff]  }
 0x24d   : > { %v1070_v22 = vld [vmem:[%s1063_s11] sm:$0xf] }
 0x24e   : > { %v1617_v23 = vsel %vm1615_vm1, %v1070_v22, 0  ;;  %v3142_v22 = vld [vmem:[%s3987_s25 + $0xa4] ss:$16 sps:$4 sm:$0xff]  }
 0x24f   : > { %2745 = vmatpush3.bf16.msra.mxu1 %v1617_v23 }
 0x250   : > { %2756 = vmatprep.subr.bf16.mxu1 %v3542_v12 }
 0x2b5   : > { %v1054_v26 = vpop.permute.xlu0 %1053 }
 0x2b6   : > { %v1055_v28 = vmul.f32 %v1054_v26, %v1051_v25  ;;  %v3143_v25 = vld [vmem:[%s3987_s25 + $0xa8] ss:$16 sps:$4 sm:$0xff]   ;;  %v3148_v26 = vld [vmem:[%s3987_s25 + $0xc4] ss:$16 sps:$4 sm:$0xff]  }
 0x2b7   : > { %v1664_v38 = vpop.permute.xlu1 %1663 }
 0x2b8   : > { %v1056_v29 = vadd.f32 %v1055_v28, %v1052_v27  ;;  %v1665_v39 = vmul.f32 %v1664_v38, %v1554_v33  ;;  %v3151_v27 = vld [vmem:[%s3987_s25 + $0xcc] ss:$16 sps:$4 sm:$0xff]   ;;  %v3146_v28 = vld [vmem:[%s3987_s25 + $0xc0] ss:$16 sps:$4 sm:$0xff]   ;;  %v3166_v38 = vld [vmem:[%s3987_s25 + $0x124] ss:$16 sps:$4 sm:$0xff]  }
 0x2b9   : > { %v1557_v31 = vpop.permute.xlu0 %1556 }
 0x2ba   : > { %v1057_v30 = vpack.c.bf16 %v1056_v29, %v1056_v29  ;;  %v1558_v34 = vmul.f32 %v1557_v31, %v1554_v33  ;;  %v1666_v42 = vadd.f32 %v1665_v39, %v1662_v41  ;;  %v3149_v29 = vld [vmem:[%s3987_s25 + $0xc8] ss:$16 sps:$4 sm:$0xff]   ;;  %v3157_v31 = vld [vmem:[%s3987_s25 + $0xec] ss:$16 sps:$4 sm:$0xff]  }
 0x2bb   : > { %v3155_v33 = vld [vmem:[%s3987_s25 + $0xe8] ss:$16 sps:$4 sm:$0xff]   ;;  %v3169_v39 = vld [vmem:[%s3987_s25 + $0x12c] ss:$16 sps:$4 sm:$0xff]  }
 0x2bc   : > { %1060 = vst [vmem:[%s1059_s5] sm:$0xf] %v1057_v30  ;;  %v1559_v37 = vadd.f32 %v1558_v34, %v1555_v35  ;;  %v1667_v43 = vpack.c.bf16 %v1666_v42, %v1666_v42  ;;  %v3154_v30 = vld [vmem:[%s3987_s25 + $0xe4] ss:$16 sps:$4 sm:$0xff]   ;;  %v3163_v35 = vld [vmem:[%s3987_s25 + $0x10c] ss:$16 sps:$4 sm:$0xff]  }
 0x2bd   : > { %v3160_v34 = vld [vmem:[%s3987_s25 + $0x104] ss:$16 sps:$4 sm:$0xff]   ;;  %v3167_v41 = vld [vmem:[%s3987_s25 + $0x128] ss:$16 sps:$4 sm:$0xff]  }
 0x2be   : > { %v1560_v40 = vpack.c.bf16 %v1559_v37, %v1559_v37  ;;  %v3161_v37 = vld [vmem:[%s3987_s25 + $0x108] ss:$16 sps:$4 sm:$0xff]   ;;  %v3172_v42 = vld [vmem:[%s3987_s25 + $0x144] ss:$16 sps:$4 sm:$0xff]  }
 0x2c3   : > { %v1067_v36 = vld [vmem:[%s1059_s5] sm:$0xf] }
 0x2c4   : > { %2739 = vmatpush3.bf16.xpose.msra.mxu0 %v1067_v36 }
 0x2c5   : > { %2750 = vmatprep.subr.bf16.mxu0 %v3542_v12 }
 0x2cb   : > { %2741 = vmatmul.mubr.bf16.vlgmr.msra.gmra.mrb[4].mxu0 %v1560_v40  ;;  %v3164_v40 = vld [vmem:[%s3987_s25 + $0x120] ss:$16 sps:$4 sm:$0xff]  }
 0x2cc   : > { %2751 = vmatpush3.bf16.xpose.msra.mxu0 %v1067_v36  ;;  %2752 = vmatprep.mubr.msk.bf16.mxu0 %vm3544_vm0, %v3542_v12  ;;  %v3158_v36 = vld [vmem:[%s3987_s25 + $0x100] ss:$16 sps:$4 sm:$0xff]  }
 0x2cd   : > { %2148 = vmatprep.subr.bf16.mxu0 %v3112_v3 }
 0x2d3   : > { %2753 = vmatmul.mubr.bf16.vlgmr.msra.gmra.mrb[8].mxu0 %v1667_v43  ;;  %v3175_v43 = vld [vmem:[%s3987_s25 + $0x14c] ss:$16 sps:$4 sm:$0xff]  }
 0x2d4   : > { %2149 = vmatpush1.bf16.msra.mxu0 %v3110_v2 }
 0x2d5   : > { %2150 = vmatprep.subr.bf16.mxu0 %v3118_v6 }
 0x2d8   : > { %2151 = vmatpush1.bf16.msra.mxu0 %v3116_v8 }
 0x2d9   : > { %2152 = vmatprep.subr.bf16.mxu0 %v3124_v10 }
 0x39e   : > { %v1595_v44 = vpop.f32.mrb[4].mxu0 }
 0x39f   : > { %v2742_v45 = vpop.f32.mrb[5].mxu0  ;;  %v1602_v46 = vsel %vm1601_vm2, %v1595_v44, -inf }
 0x3a0   : > { %1603 = vmax.xlane.f32.xlu1 %v1602_v46  ;;  %v1598_v47 = vpop.f32.mrb[6].mxu0  ;;  %v3173_v45 = vld [vmem:[%s3987_s25 + $0x148] ss:$16 sps:$4 sm:$0xff]   ;;  %v3178_v46 = vld [vmem:[%s3987_s25 + $0x164] ss:$16 sps:$4 sm:$0xff]  }
 0x3a1   : > { %v2743_v48 = vpop.f32.mrb[7].mxu0  ;;  %v3181_v47 = vld [vmem:[%s3987_s25 + $0x16c] ss:$16 sps:$4 sm:$0xff]  }
 0x3a2   : > { %v3176_v48 = vld [vmem:[%s3987_s25 + $0x160] ss:$16 sps:$4 sm:$0xff]  }
 0x3a6   : > { %v1702_v49 = vpop.f32.mrb[8].mxu0 }
 0x3a7   : > { %v2754_v50 = vpop.f32.mrb[9].mxu0  ;;  %v1708_v51 = vsel %vm1601_vm2, %v1702_v49, -inf }
 0x3a8   : > { %1709 = vmax.xlane.f32.xlu0 %v1708_v51  ;;  %v1705_v52 = vpop.f32.mrb[10].mxu0  ;;  %v3184_v50 = vld [vmem:[%s3987_s25 + $0x184] ss:$16 sps:$4 sm:$0xff]   ;;  %v3187_v51 = vld [vmem:[%s3987_s25 + $0x18c] ss:$16 sps:$4 sm:$0xff]  }
 0x3a9   : > { %v2755_v53 = vpop.f32.mrb[11].mxu0  ;;  %v3182_v52 = vld [vmem:[%s3987_s25 + $0x180] ss:$16 sps:$4 sm:$0xff]  }
 0x3aa   : > { %v3185_v53 = vld [vmem:[%s3987_s25 + $0x188] ss:$16 sps:$4 sm:$0xff]  }
 0x42d   : > { %v1604_v54 = vpop.xlane.xlu1 %1603 }
 0x42e   : > { %v1605_v55 = vsub.f32 %v1595_v44, %v1604_v54  ;;  %v3170_v44 = vld [vmem:[%s3987_s25 + $0x140] ss:$16 sps:$4 sm:$0xff]   ;;  %v3190_v54 = vld [vmem:[%s3987_s25 + $0x1a4] ss:$16 sps:$4 sm:$0xff]  }
 0x430   : > { %v1606_v56 = vmul.f32 1.442695, %v1605_v55  ;;  %v3193_v55 = vld [vmem:[%s3987_s25 + $0x1ac] ss:$16 sps:$4 sm:$0xff]  }
 0x432   : > { %3206 = vpow2.f32 %v1606_v56  ;;  %v3188_v56 = vld [vmem:[%s3987_s25 + $0x1a0] ss:$16 sps:$4 sm:$0xff]  }
 0x435   : > { %v1710_v57 = vpop.xlane.xlu0 %1709 }
 0x436   : > { %v1711_v58 = vsub.f32 %v1702_v49, %v1710_v57  ;;  %v3179_v49 = vld [vmem:[%s3987_s25 + $0x168] ss:$16 sps:$4 sm:$0xff]  }
 0x437   : > { %v3191_v57 = vld [vmem:[%s3987_s25 + $0x1a8] ss:$16 sps:$4 sm:$0xff]  }
 0x438   : > { %v1712_v59 = vmul.f32 1.442695, %v1711_v58  ;;  %v3196_v58 = vld [vmem:[%s3987_s25 + $0x1c4] ss:$16 sps:$4 sm:$0xff]  }
 0x43a   : > { %3208 = vpow2.f32 %v1712_v59  ;;  %v3194_v59 = vld [vmem:[%s3987_s25 + $0x1c0] ss:$16 sps:$4 sm:$0xff]  }
 0x43c   : > { %v3207_v60 = vpop.eup %3206 }
 0x43d   : > { %v1608_v61 = vsel %vm1601_vm2, %v3207_v60, 0.0  ;;  %v1611_v62 = vpack.c.bf16 %v3207_v60, %v3207_v60  ;;  %v3197_v60 = vld [vmem:[%s3987_s25 + $0x1c8] ss:$16 sps:$4 sm:$0xff]  }
 0x43e   : > { %1609 = vadd.xlane.f32.xlu1 %v1608_v61  ;;  %v3199_v61 = vld [vmem:[%s3987_s25 + $0x1cc] ss:$16 sps:$4 sm:$0xff]  }
 0x43f   : > { %2747 = vmatmul.mubr.msk.bf16.vlgmr.msra.gmra.mrb[4].mxu1 %vm1601_vm2, %v1611_v62  ;;  %v3202_v62 = vld [vmem:[%s3987_s25 + $0x1e4] ss:$16 sps:$4 sm:$0xff]  }
 0x440   : > { %2757 = vmatpush3.bf16.msra.mxu1 %v1617_v23  ;;  %2758 = vmatprep.mubr.msk.bf16.mxu1 %vm3544_vm0, %v3542_v12  ;;  %v3122_v12 = vld [vmem:[%s3987_s25 + $0x40] ss:$16 sps:$4 sm:$0xff]   ;;  %v3145_v23 = vld [vmem:[%s3987_s25 + $0xac] ss:$16 sps:$4 sm:$0xff]  }
 0x441   : > { %2189 = vmatprep.subr.bf16.mxu1 %v3115_v5  ;;  %2153 = vmatpush1.bf16.msra.mxu0 %v3122_v12 }
 0x442   : > { %2154 = vmatprep.subr.bf16.mxu0 %v3130_v14 }
 0x444   : > { %v3209_v63 = vpop.eup %3208 }
 0x445   : > { %v1714_v0 = vsel %vm1601_vm2, %v3209_v63, 0.0  ;;  %v1717_v1 = vpack.c.bf16 %v3209_v63, %v3209_v63  ;;  %2155 = vmatpush1.bf16.msra.mxu0 %v3128_v16  ;;  %v3205_v63 = vld [vmem:[%s3987_s25 + $0x1ec] ss:$16 sps:$4 sm:$0xff]  }
 0x446   : > { %1715 = vadd.xlane.f32.xlu0 %v1714_v0  ;;  %2156 = vmatprep.subr.bf16.mxu0 %v3136_v18  ;;  %v3200_v0 = vld [vmem:[%s3987_s25 + $0x1e0] ss:$16 sps:$4 sm:$0xff]  }
 0x447   : > { %2759 = vmatmul.mubr.msk.bf16.vlgmr.msra.gmra.mrb[8].mxu1 %vm1601_vm2, %v1717_v1  ;;  %v3203_v1 = vld [vmem:[%s3987_s25 + $0x1e8] ss:$16 sps:$4 sm:$0xff]  }
 0x448   : > { %2190 = vmatpush1.bf16.msra.mxu1 %v3113_v4 }
 0x449   : > { %2191 = vmatprep.subr.bf16.mxu1 %v3121_v7  ;;  %2157 = vmatpush1.bf16.msra.mxu0 %v3134_v20 }
 0x44a   : > { %2158 = vmatprep.subr.bf16.mxu0 %v3142_v22 }
 0x44c   : > { %2192 = vmatpush1.bf16.msra.mxu1 %v3119_v9 }
 0x44d   : > { %2193 = vmatprep.subr.bf16.mxu1 %v3127_v11  ;;  %2159 = vmatpush1.bf16.msra.mxu0 %v3140_v24 }
 0x44e   : > { %2160 = vmatprep.subr.bf16.mxu0 %v3148_v26 }
 0x450   : > { %2194 = vmatpush1.bf16.msra.mxu1 %v3125_v13 }
 0x451   : > { %2195 = vmatprep.subr.bf16.mxu1 %v3133_v15  ;;  %2161 = vmatpush1.bf16.msra.mxu0 %v3146_v28 }
 0x452   : > { %2162 = vmatprep.subr.bf16.mxu0 %v3154_v30 }
 0x454   : > { %2196 = vmatpush1.bf16.msra.mxu1 %v3131_v17 }
 0x455   : > { %2197 = vmatprep.subr.bf16.mxu1 %v3139_v19  ;;  %2163 = vmatpush1.bf16.msra.mxu0 %v3152_v32 }
 0x456   : > { %2164 = vmatprep.subr.bf16.mxu0 %v3160_v34 }
 0x458   : > { %2198 = vmatpush1.bf16.msra.mxu1 %v3137_v21 }
 0x459   : > { %2199 = vmatprep.subr.bf16.mxu1 %v3145_v23  ;;  %2165 = vmatpush1.bf16.msra.mxu0 %v3158_v36 }
 0x45a   : > { %2166 = vmatprep.subr.bf16.mxu0 %v3166_v38 }
 0x45c   : > { %2200 = vmatpush1.bf16.msra.mxu1 %v3143_v25 }
 0x45d   : > { %2201 = vmatprep.subr.bf16.mxu1 %v3151_v27  ;;  %2167 = vmatpush1.bf16.msra.mxu0 %v3164_v40 }
 0x45e   : > { %2168 = vmatprep.subr.bf16.mxu0 %v3172_v42 }
 0x460   : > { %2202 = vmatpush1.bf16.msra.mxu1 %v3149_v29 }
 0x461   : > { %2203 = vmatprep.subr.bf16.mxu1 %v3157_v31  ;;  %2169 = vmatpush1.bf16.msra.mxu0 %v3170_v44 }
 0x462   : > { %2170 = vmatprep.subr.bf16.mxu0 %v3178_v46 }
 0x464   : > { %2204 = vmatpush1.bf16.msra.mxu1 %v3155_v33 }
 0x465   : > { %2205 = vmatprep.subr.bf16.mxu1 %v3163_v35  ;;  %2171 = vmatpush1.bf16.msra.mxu0 %v3176_v48 }
 0x466   : > { %2172 = vmatprep.subr.bf16.mxu0 %v3184_v50 }
 0x468   : > { %2206 = vmatpush1.bf16.msra.mxu1 %v3161_v37 }
 0x469   : > { %2207 = vmatprep.subr.bf16.mxu1 %v3169_v39  ;;  %2173 = vmatpush1.bf16.msra.mxu0 %v3182_v52 }
 0x46a   : > { %2174 = vmatprep.subr.bf16.mxu0 %v3190_v54 }
 0x46c   : > { %2208 = vmatpush1.bf16.msra.mxu1 %v3167_v41 }
 0x46d   : > { %2209 = vmatprep.subr.bf16.mxu1 %v3175_v43  ;;  %2175 = vmatpush1.bf16.msra.mxu0 %v3188_v56 }
 0x46e   : > { %2176 = vmatprep.subr.bf16.mxu0 %v3196_v58 }
 0x470   : > { %2210 = vmatpush1.bf16.msra.mxu1 %v3173_v45 }
 0x471   : > { %2211 = vmatprep.subr.bf16.mxu1 %v3181_v47  ;;  %2177 = vmatpush1.bf16.msra.mxu0 %v3194_v59 }
 0x472   : > { %2178 = vmatprep.subr.bf16.mxu0 %v3202_v62 }
 0x474   : > { %2212 = vmatpush1.bf16.msra.mxu1 %v3179_v49 }
 0x475   : > { %2213 = vmatprep.subr.bf16.mxu1 %v3187_v51  ;;  %2179 = vmatpush1.bf16.msra.mxu0 %v3200_v0 }
 0x478   : > { %2214 = vmatpush1.bf16.msra.mxu1 %v3185_v53 }
 0x479   : > { %2215 = vmatprep.subr.bf16.mxu1 %v3193_v55 }
 0x47c   : > { %2216 = vmatpush1.bf16.msra.mxu1 %v3191_v57 }
 0x47d   : > { %2217 = vmatprep.subr.bf16.mxu1 %v3199_v61 }
 0x480   : > { %2218 = vmatpush1.bf16.msra.mxu1 %v3197_v60 }
 0x481   : > { %2219 = vmatprep.subr.bf16.mxu1 %v3205_v63 }
 0x484   : > { %2220 = vmatpush1.bf16.msra.mxu1 %v3203_v1 }
 0x4cb   : > { %v1610_v2 = vpop.xlane.xlu1 %1609 }
 0x4cc   : > { %3210 = vrcp.f32 %v1610_v2 }
 0x4d3   : > { %v1716_v3 = vpop.xlane.xlu0 %1715 }
 0x4d4   : > { %3212 = vrcp.f32 %v1716_v3 }
 0x4d6   : > { %v3211_v8 = vpop.eup %3210 }
 0x4de   : > { %v3213_v9 = vpop.eup %3212 }
 0x512   : > { %v1653_v4 = vpop.f32.mrb[4].mxu1 }
 0x513   : > { %v2748_v5 = vpop.f32.mrb[5].mxu1  ;;  %v1660_v10 = vmul.f32 %v3211_v8, %v1653_v4 }
 0x514   : > { %v1656_v6 = vpop.f32.mrb[6].mxu1 }
 0x515   : > { %v2749_v7 = vpop.f32.mrb[7].mxu1  ;;  %v1661_v17 = vpack.c.bf16 %v1660_v10, %v1660_v10 }
 0x51a   : > { %v1755_v11 = vpop.f32.mrb[8].mxu1 }
 0x51b   : > { %v1762_v12 = vmul.f32 %v3213_v9, %v1755_v11  ;;  %v2760_v13 = vpop.f32.mrb[9].mxu1 }
 0x51c   : > { %v1758_v14 = vpop.f32.mrb[10].mxu1 }
 0x51d   : > { %v1763_v15 = vpack.c.bf16 %v1762_v12, %v1762_v12  ;;  %v2761_v16 = vpop.f32.mrb[11].mxu1 }
 0x51f   : > { %2180 = vmatprep.mubr.bf16.mxu0 %v1763_v15  ;;  %2221 = vmatprep.mubr.bf16.mxu1 %v1763_v15 }
 0x520   : > { %2181 = vmatmul.mubr.bf16.vlgmr.msra.gmra.mrb[12].mxu0 %v1661_v17  ;;  %2222 = vmatmul.mubr.bf16.vlgmr.msra.gmra.mrb[12].mxu1 %v1661_v17 }
 0x5f0   : > { %2233 = sbr.rel (%p2717_p7) target bundleno = 1527 (0x5f7), region = 88 }
 0x5f3   : > { %v2182_v18 = vpop.f32.mrb[12].mxu0  ;;  %v2223_v19 = vpop.f32.mrb[12].mxu1 }
 0x5f4   : > { %v2184_v20 = vpop.f32.mrb[13].mxu0  ;;  %v2225_v21 = vpop.f32.mrb[13].mxu1  ;;  %2234 = vst [vmem:[%s558_s16] sm:$0xff] (!%p2717_p7), %v2182_v18  ;;  %2236 = vst [vmem:[%s558_s16 + $0x10] sm:$0xff] (!%p2717_p7), %v2223_v19 }
 0x5f5   : > { %v2186_v22 = vpop.f32.mrb[14].mxu0  ;;  %v2227_v23 = vpop.f32.mrb[14].mxu1  ;;  %2235 = vst [vmem:[%s558_s16 + $0x8] sm:$0xff] (!%p2717_p7), %v2184_v20  ;;  %2237 = vst [vmem:[%s558_s16 + $0x18] sm:$0xff] (!%p2717_p7), %v2225_v21 }
 0x5f6   : > { %v2187_v24 = vpop.f32.mrb[15].mxu0  ;;  %v2228_v25 = vpop.f32.mrb[15].mxu1 }
 0x5f7 PF: > { %p2718_p13 = scmp.le.s32.totalorder %s3514_s15, 0 }
 0x5f9   : > { %2241 = sbr.rel (%p2718_p13) target bundleno = 1536 (0x600), region = 92 }
 0x5fb   : > { %v2242_v26 = vld [vmem:[%s558_s16] sm:$0xff] (!%p2718_p13)  ;;  %v2244_v28 = vld [vmem:[%s558_s16 + $0x10] sm:$0xff] (!%p2718_p13) }
 0x5fc   : > { %v2243_v27 = vld [vmem:[%s558_s16 + $0x8] sm:$0xff] (!%p2718_p13)  ;;  %v2246_v29 = vadd.f32 (!%p2718_p13), %v2242_v26, %v2182_v18  ;;  %v2248_v31 = vadd.f32 (!%p2718_p13), %v2244_v28, %v2223_v19  ;;  %v2245_v32 = vld [vmem:[%s558_s16 + $0x18] sm:$0xff] (!%p2718_p13) }
 0x5fd   : > { %v2247_v30 = vadd.f32 (!%p2718_p13), %v2243_v27, %v2184_v20  ;;  %v2249_v33 = vadd.f32 (!%p2718_p13), %v2245_v32, %v2225_v21 }
 0x5fe   : > { %2250 = vst [vmem:[%s558_s16] sm:$0xff] (!%p2718_p13), %v2246_v29  ;;  %2252 = vst [vmem:[%s558_s16 + $0x10] sm:$0xff] (!%p2718_p13), %v2248_v31 }
 0x5ff   : > { %2251 = vst [vmem:[%s558_s16 + $0x8] sm:$0xff] (!%p2718_p13), %v2247_v30  ;;  %2253 = vst [vmem:[%s558_s16 + $0x18] sm:$0xff] (!%p2718_p13), %v2249_v33 }
 0x600 PF: > { %s4394_s23 = sld [smem:[#allocation25_spill]]  ;;  %s4395_s28 = sld [smem:[#allocation33_spill]] }
 0x601   : > { %s4396_s30 = sld [smem:[#allocation41_spill]]  ;;  %s2271_s6 = sshll.u32 %s558_s16, 4  ;;  %s2272_s6 = int_to_ptr.vmem [resolvable:$true] %s2271_s6 }
 0x602   : > { %s2255_s25 = scalar_lea.sflag [#allocation6], %s3957_s17  ;;  %s3392_s1 = scalar_lea.vmem %s2272_s6, 512 }
 0x603   : > { %p3393_p11 = scmp.ne.s32.totalorder %s2272_s6, %s3392_s1  ;;  %s3545_s7 = smov [#allocation15]  }
 0x604   : > { %s3396_s9 = sshll.u32 %s3545_s7, 4  ;;  %s3397_s9 = int_to_ptr.vmem [resolvable:$false] %s3396_s9 }
 0x605   : > { %s3398_s11 = scalar_lea.vmem %s3397_s9, 1024  ;;  %p3399_p10 = scmp.lt.s32.totalorder %s2272_s6, %s3397_s9 }
 0x606   : > { %s2729_s21 = sshll.u32 %s4394_s23, 9  ;;  %p4398_p4 = scmp.ne.s32.totalorder %s4395_s28, 0 }
 0x607   : > { %s4397_s3 = smov %s4396_s30  ;;  %s4242_s14 = scalar_lea.hbm %s4396_s30, %s2729_s21 }
 0x608   : > { %p3394_p2 = pnand %p3393_p11, %p4398_p4  ;;  %p3400_p9 = scmp.lt.s32.totalorder %s3398_s11, %s3392_s1 }
 0x60a   : > { %p3395_p6 = pneg %p3394_p2  ;;  %p3401_p12 = por %p3400_p9, %p3399_p10 }
 0x60c   : > { %p3402_p0 = pnand %p3401_p12, %p3395_p6 }
 0x60e   : > { %3405 = shalt.err (!%p3402_p0)
}
 0x60f   : > { %s3406_s17 = scalar_lea.hbm %s4242_s14, 512  ;;  %s3410_s29 = scalar_lea.hbm %s4397_s3, 1024 }
 0x610   : > { %p3407_p3 = scmp.ne.s32.totalorder %s4242_s14, %s3406_s17  ;;  %p3411_p8 = scmp.lt.u32.totalorder %s4242_s14, %s4397_s3 }
 0x611   : > { %p3412_p7 = scmp.lt.u32.totalorder %s3410_s29, %s3406_s17  ;;  %p3414_p11 = scmp.lt.u32.totalorder %s3406_s17, %s4242_s14 }
 0x612   : > { %p3408_p1 = pnand %p3407_p3, %p4398_p4 }
 0x613   : > { %p3413_p13 = por %p3412_p7, %p3411_p8 }
 0x614   : > { %p3409_p5 = pneg %p3408_p1 }
 0x615   : > { %p3415_p2 = por %p3414_p11, %p3413_p13 }
 0x617   : > { %p3416_p6 = pnand %p3415_p2, %p3409_p5 }
 0x619   : > { %3419 = shalt.err (!%p3416_p6)
}
 0x61a   : > { %2784 = dma.vmem_to_hbm [thread:$0]  (%p4398_p4), %s2272_s6, 512, %s4242_s14, %s2255_s25  }
 0x61b PF: > { %s4399_s18 = sld [smem:[#allocation28_spill]]  ;;  %s4400_s5 = sld [smem:[#allocation23_spill]] }
 0x61c   : > { %s4401_s12 = sld [smem:[#allocation34_spill]] }
 0x621   : > { %p2813_p10 = scmp.ge.s32.totalorder %s4399_s18, 2  ;;  %s2283_s0 = sand.u32 1, %s4400_s5  }
 0x622   : > { %p4402_p9 = scmp.ne.s32.totalorder %s4401_s12, 0  ;;  %s2284_s19 = scalar_lea.sflag [#allocation6], %s2283_s0 }
 0x624   : > { %p2807_p12 = pnand %p2813_p10, %p4402_p9 }
 0x626   : > { %3485 = dma.done.wait (!%p2807_p12), %s2284_s19, 512  }
 0x627   : > { %3487 = vsyncadd (!%p2807_p12), %s2284_s19, 4294966784  ;;  %s32_s19 = sadd.s32 1, %s4399_s18   ;;  %s4403_s16 = sld [smem:[#allocation22_spill]] }
 0x628   : > { %p29_p0 = scmp.ge.s32.totalorder %s32_s19, 6   ;;  %s4404_s11 = sld [smem:[#allocation31_spill]] }
 0x629   : > { %s4405_s23 = sld [smem:[#allocation24_spill]]  ;;  %s4406_s14 = sld [smem:[#allocation32_spill]] }
 0x62a   : > { %s4407_s15 = sld [smem:[#allocation26_spill]]  ;;  %s4408_s28 = sld [smem:[#allocation27_spill]] }
 0x62b   : > { %s4409_s17 = sld [smem:[#allocation29_spill]]  ;;  %s4410_s18 = sld [smem:[#allocation30_spill]] }
 0x62c   : > { %s4411_s30 = smov %s3494_s10  ;;  %s4413_s12 = smov %s3506_s13 }
 0x62d   : > { %s4412_s10 = smov %s4403_s16  ;;  %31 = sbr.rel (!%p29_p0) target bundleno = 22 (0x16), region = 173 }
 0x62f   : > { %s4414_s13 = smov %s4405_s23 }
 0x630   : > { %s4415_s16 = smov %s4408_s28 }
 0x634   :  { %2289 = vsyncpa [#allocation5], 1 }
 0x635   :  { %2291 = vsyncpa [#allocation5 + $0x1], 1 }
 0x636   :  { %2292 = vsyncpa [#allocation8], 1 }
 0x637   :  { %2294 = vsyncpa [#allocation8 + $0x1], 1 }
 0x638   :  { %2295 = vsyncpa [#allocation11], 1 }
 0x639   :  { %2297 = vsyncpa [#allocation11 + $0x1], 1 }
 0x63a   :  { %2298 = vsyncpa [#allocation14], 1 }
 0x63b   :  { %2299 = vsyncpa [#allocation6], 1 }
 0x63c   :  { %2301 = vsyncpa [#allocation6 + $0x1], 1 }

</bundles_post_ra>
